<compile_context>
chip_gen: v7x
topology: tpu7x:2x2x1
jax: 0.10.0
libtpu: 0.0.40
codegen_flags: <defaults>
</compile_context>

<pallas_src>
import math
import jax
import jax.numpy as jnp
from jax.experimental import pallas as pl
from jax.experimental.pallas import tpu as pltpu

# ---------------- model hyperparameters (small, BERT-like) ----------------
B = 2              # batch
ST = 8             # text sequence length
SV = 4             # visual sequence length
S_REAL = ST + SV   # real sequence length (12)
S_PAD = 16         # padded sequence length (multiple of 8 sublanes)
BS = B * S_PAD     # 32 rows processed as one slab
H = 64             # hidden size
NUM_HEADS = 2
HEAD_DIM = H // NUM_HEADS
INTER = 128        # intermediate (FFN) size
DV = 32            # visual_embedding_dim (small synthetic stand-in for 2048)
VOCAB = 100
MAX_POS = 64
NUM_LAYERS = 2
LN_EPS = 1e-12
WA_W = 3 * H + H + INTER    # packed per-layer matrix lanes: wqkv | wo | wi  (384)
LVEC_W = 3 * H              # packed per-layer vector lanes (192)


# ---------------- in-kernel helpers ----------------
def _layernorm(x, gamma, beta):
    mu = jnp.mean(x, axis=-1, keepdims=True)
    var = jnp.mean((x - mu) * (x - mu), axis=-1, keepdims=True)
    inv = jax.lax.rsqrt(var + LN_EPS)
    return (x - mu) * inv * gamma + beta


def _gelu(x):
    # TODO(synk): tanh approximation; HF BertIntermediate default is exact erf GELU.
    c = math.sqrt(2.0 / math.pi)
    return 0.5 * x * (1.0 + jnp.tanh(c * (x + 0.044715 * x * x * x)))


# ---------------- fused kernel: embedding LN + encoder + pooler ----------------
def fused_kernel(x0_ref, bias_ref, wa_ref, wo2_ref, lvec_ref, gvec_ref, poolw_ref,
                 seq_ref, pooled_ref):
    f32 = jnp.float32
    bf16 = jnp.bfloat16

    # ---- 1. embedding LayerNorm (rows were pre-assembled in the JAX glue) ----
    x = _layernorm(x0_ref[...], gvec_ref[0:1, :], gvec_ref[1:2, :])        # (BS, H) f32
    bias = bias_ref[...]                                                   # (BS, BS) additive

    scale = 1.0 / math.sqrt(HEAD_DIM)

    # ---- 2. transformer layers (static unroll over NUM_LAYERS) ----
    for l in range(NUM_LAYERS):
        wa = wa_ref[l]                                                     # (H, WA_W) bf16
        wqkv = wa[:, 0:3 * H]                                              # (H, 3H)
        wo = wa[:, 3 * H:4 * H]                                            # (H, H)
        wi = wa[:, 4 * H:4 * H + INTER]                                    # (H, INTER)
        wo2 = wo2_ref[l]                                                   # (INTER, H) bf16
        lv = lvec_ref[l]                                                   # (8, LVEC_W) f32
        bqkv = lv[0:1, :]                                                  # (1, 3H)
        bi = lv[1:2, :INTER]
        bo = lv[2:3, :H]
        ln1g = lv[3:4, :H]
        ln1b = lv[4:5, :H]
        bo2 = lv[5:6, :H]
        ln2g = lv[6:7, :H]
        ln2b = lv[7:8, :H]

        # fused QKV projection for the whole (B*S_PAD) slab
        qkv = jnp.dot(x.astype(bf16), wqkv, preferred_element_type=f32) + bqkv   # (BS, 3H)

        # batched-over-B attention: block-diagonal + pad masking lives in `bias`
        ctx_heads = []
        for h in range(NUM_HEADS):                                         # static unroll
            q_h = qkv[:, h * HEAD_DIM:(h + 1) * HEAD_DIM]                  # (BS, DH)
            k_h = qkv[:, H + h * HEAD_DIM:H + (h + 1) * HEAD_DIM]
            v_h = qkv[:, 2 * H + h * HEAD_DIM:2 * H + (h + 1) * HEAD_DIM]
            s = jax.lax.dot_general(q_h, k_h, (((1,), (1,)), ((), ())),
                                    preferred_element_type=f32)            # (BS, BS)
            s = s * scale + bias
            s = s - jnp.max(s, axis=-1, keepdims=True)
            p = jnp.exp(s)
            p = p / jnp.sum(p, axis=-1, keepdims=True)                     # exact softmax
            ctx_heads.append(jnp.dot(p, v_h, preferred_element_type=f32))  # (BS, DH)
        ctx = jnp.concatenate(ctx_heads, axis=-1)                          # (BS, H) lane concat
        attn = jnp.dot(ctx.astype(bf16), wo, preferred_element_type=f32) + bo

        h1 = _layernorm(attn + x, ln1g, ln1b)
        inter = _gelu(jnp.dot(h1.astype(bf16), wi, preferred_element_type=f32) + bi)
        ffn = jnp.dot(inter.astype(bf16), wo2, preferred_element_type=f32) + bo2
        x = _layernorm(ffn + h1, ln2g, ln2b)

    seq_ref[...] = x                                                       # (BS, H)

    # ---- 3. BertPooler: CLS rows are 0 and S_PAD (sublane-aligned) ----
    cls = jnp.concatenate([x[b * S_PAD:b * S_PAD + 1, :] for b in range(B)], axis=0)  # (B, H)
    pooled_ref[...] = jnp.tanh(
        jnp.dot(cls.astype(bf16), poolw_ref[...], preferred_element_type=f32)
        + gvec_ref[2:3, :])


# ---------------- parameter construction (deterministic, synthetic) ----------
def make_params(key):
    def nrm(k, shape):
        return (0.02 * jax.random.normal(k, shape)).astype(jnp.float32)

    keys = iter(jax.random.split(key, 64))
    p = {}
    # embedding tables (gathered in plain JAX glue)
    p["word_emb"] = nrm(next(keys), (VOCAB, H))
    p["pos_emb"] = nrm(next(keys), (MAX_POS, H))
    p["tok_type_emb"] = nrm(next(keys), (2, H))
    p["vis_type_emb"] = nrm(next(keys), (2, H))
    p["vis_pos_emb"] = nrm(next(keys), (1, SV, H))
    p["vis_proj_w"] = nrm(next(keys), (DV, H))
    p["vis_proj_b"] = jnp.zeros((H,), jnp.float32)

    # global small vectors: embedding LN gamma/beta + pooler bias, packed (3, H)
    p["gvec"] = jnp.stack([jnp.ones((H,), jnp.float32),
                           jnp.zeros((H,), jnp.float32),
                           jnp.zeros((H,), jnp.float32)], axis=0)

    def pad_row(v):
        return jnp.pad(v, (0, LVEC_W - v.shape[0]))

    wa_l, wo2_l, lvec_l = [], [], []
    for _ in range(NUM_LAYERS):
        wq = nrm(next(keys), (H, H))
        wk = nrm(next(keys), (H, H))
        wv = nrm(next(keys), (H, H))
        wo = nrm(next(keys), (H, H))
        wi = nrm(next(keys), (H, INTER))
        wo2 = nrm(next(keys), (INTER, H))
        wa_l.append(jnp.concatenate([wq, wk, wv, wo, wi], axis=1))     # (H, WA_W)
        wo2_l.append(wo2)
        rows = [jnp.zeros((LVEC_W,), jnp.float32),                     # bqkv
                pad_row(jnp.zeros((INTER,), jnp.float32)),             # bi
                pad_row(jnp.zeros((H,), jnp.float32)),                 # bo
                pad_row(jnp.ones((H,), jnp.float32)),                  # ln1 gamma
                pad_row(jnp.zeros((H,), jnp.float32)),                 # ln1 beta
                pad_row(jnp.zeros((H,), jnp.float32)),                 # bo2
                pad_row(jnp.ones((H,), jnp.float32)),                  # ln2 gamma
                pad_row(jnp.zeros((H,), jnp.float32))]                 # ln2 beta
        lvec_l.append(jnp.stack(rows, axis=0))                         # (8, LVEC_W)

    # MXU weights in bf16 (halves weight DMA); vector/elementwise params stay f32
    p["wa"] = jnp.stack(wa_l).astype(jnp.bfloat16)        # (L, H, WA_W)
    p["wo2"] = jnp.stack(wo2_l).astype(jnp.bfloat16)      # (L, INTER, H)
    p["lvec"] = jnp.stack(lvec_l)                         # (L, 8, LVEC_W) f32
    p["pool_w"] = nrm(next(keys), (H, H)).astype(jnp.bfloat16)
    return p


# ---------------- full forward (FashionFAEBase.forward) ----------------------
def fashionfae_forward(params, input_ids, token_type_ids,
                       visual_embeddings, visual_embeddings_type, attention_mask):
    f32 = jnp.float32

    # --- plain-JAX glue: embedding-table gathers + visual projection + row assembly ---
    txt = (jnp.take(params["word_emb"], input_ids, axis=0)
           + params["pos_emb"][:ST][None, :, :]
           + jnp.take(params["tok_type_emb"], token_type_ids, axis=0))          # (B, ST, H)
    vproj = (jnp.einsum("bvd,dh->bvh", visual_embeddings, params["vis_proj_w"])
             + params["vis_proj_b"])                                            # (B, SV, H)
    vemb = (vproj
            + jnp.take(params["vis_type_emb"], visual_embeddings_type, axis=0)
            + params["vis_pos_emb"])                                            # (B, SV, H)
    pad_rows = jnp.zeros((B, S_PAD - S_REAL, H), f32)
    x0 = jnp.concatenate([txt, vemb, pad_rows], axis=1).reshape(BS, H)          # (BS, H)

    # additive attention bias: (1-mask)*-10000 on pad columns + cross-batch block-diag
    mask = attention_mask.astype(f32).reshape(B, S_REAL)
    mask_pad = jnp.concatenate([mask, jnp.zeros((B, S_PAD - S_REAL), f32)], axis=1)
    ext = (1.0 - mask_pad) * -10000.0                                           # (B, S_PAD)
    row_batch = jnp.repeat(jnp.arange(B), S_PAD)                                # (BS,)
    same_batch = row_batch[:, None] == row_batch[None, :]                       # (BS, BS)
    bias = jnp.where(same_batch, jnp.reshape(ext, (-1,))[None, :], -10000.0)    # (BS, BS)

    vmem = pl.BlockSpec(memory_space=pltpu.MemorySpace.VMEM)
    seq_flat, pooled = pl.pallas_call(
        fused_kernel,
        out_shape=(jax.ShapeDtypeStruct((BS, H), f32),
                   jax.ShapeDtypeStruct((B, H), f32)),
        in_specs=[vmem] * 7,
        out_specs=(vmem, vmem),
    )(x0, bias, params["wa"], params["wo2"], params["lvec"],
      params["gvec"], params["pool_w"])

    sequence_output = seq_flat.reshape(B, S_PAD, H)[:, :S_REAL, :]   # drop pad rows
    pooled_output = pooled
    attn_data_list = []  # output_attentions / output_hidden_states are False
    return sequence_output, pooled_output, attn_data_list


# TODO(synk): FashionFAEBaseModel._forward is abstract (NotImplementedError) in the
# reference; the implemented compute is FashionFAEBase.forward (the BERT path above).

if __name__ == "__main__":
    key = jax.random.PRNGKey(0)
    k_par, k_ids, k_vis = jax.random.split(key, 3)

    params = make_params(k_par)

    input_ids = jax.random.randint(k_ids, (B, ST), 0, VOCAB, dtype=jnp.int32)
    token_type_ids = jnp.zeros((B, ST), jnp.int32)
    visual_embeddings = jax.random.normal(k_vis, (B, SV, DV), jnp.float32)
    visual_embeddings_type = jnp.ones((B, SV), jnp.int32)
    attention_mask = jnp.ones((B, S_REAL), jnp.float32)

    fwd = jax.jit(fashionfae_forward)
    seq_out, pooled, attn_list = fwd(params, input_ids, token_type_ids,
                                     visual_embeddings, visual_embeddings_type,
                                     attention_mask)

    jax.block_until_ready(seq_out)
    jax.block_until_ready(pooled)
    assert seq_out.shape == (B, S_REAL, H)
    assert pooled.shape == (B, H)
    assert attn_list == []
    print("KERNEL_OK")
</pallas_src>

<mosaic_0001>
module attributes {stable_mosaic.version = 11 : i64} {
  func.func @fused_kernel(%arg0: memref<32x64xf32, #tpu.memory_space<vmem>>, %arg1: memref<32x32xf32, #tpu.memory_space<vmem>>, %arg2: memref<2x64x384xbf16, #tpu.memory_space<vmem>>, %arg3: memref<2x128x64xbf16, #tpu.memory_space<vmem>>, %arg4: memref<2x8x192xf32, #tpu.memory_space<vmem>>, %arg5: memref<3x64xf32, #tpu.memory_space<vmem>>, %arg6: memref<64x64xbf16, #tpu.memory_space<vmem>>, %arg7: memref<32x64xf32, #tpu.memory_space<vmem>>, %arg8: memref<2x64xf32, #tpu.memory_space<vmem>>) attributes {dimension_semantics = [], scalar_prefetch = 0 : i64, scratch_operands = 0 : i64, tpu.core_type = #tpu.core_type<tc>} {
    %c0 = arith.constant 0 : index
    %c0_0 = arith.constant 0 : index
    %0 = vector.load %arg0[%c0, %c0_0] : memref<32x64xf32, #tpu.memory_space<vmem>>, vector<32x64xf32>
    %c0_1 = arith.constant 0 : index
    %c0_2 = arith.constant 0 : index
    %1 = vector.load %arg5[%c0_1, %c0_2] : memref<3x64xf32, #tpu.memory_space<vmem>>, vector<1x64xf32>
    %c1 = arith.constant 1 : index
    %c0_3 = arith.constant 0 : index
    %2 = vector.load %arg5[%c1, %c0_3] : memref<3x64xf32, #tpu.memory_space<vmem>>, vector<1x64xf32>
    %cst = arith.constant dense<0.000000e+00> : vector<32xf32>
    %3 = vector.multi_reduction <add>, %0, %cst [1] : vector<32x64xf32> to vector<32xf32>
    %4 = vector.shape_cast %3 : vector<32xf32> to vector<32x1xf32>
    %cst_4 = arith.constant 6.400000e+01 : f32
    %5 = vector.broadcast %cst_4 : f32 to vector<32x1xf32>
    %6 = arith.divf %4, %5 : vector<32x1xf32>
    %7 = vector.broadcast %6 : vector<32x1xf32> to vector<32x64xf32>
    %8 = arith.subf %0, %7 : vector<32x64xf32>
    %9 = vector.broadcast %6 : vector<32x1xf32> to vector<32x64xf32>
    %10 = arith.subf %0, %9 : vector<32x64xf32>
    %11 = arith.mulf %8, %10 : vector<32x64xf32>
    %cst_5 = arith.constant dense<0.000000e+00> : vector<32xf32>
    %12 = vector.multi_reduction <add>, %11, %cst_5 [1] : vector<32x64xf32> to vector<32xf32>
    %13 = vector.shape_cast %12 : vector<32xf32> to vector<32x1xf32>
    %cst_6 = arith.constant 6.400000e+01 : f32
    %14 = vector.broadcast %cst_6 : f32 to vector<32x1xf32>
    %15 = arith.divf %13, %14 : vector<32x1xf32>
    %cst_7 = arith.constant 9.99999996E-13 : f32
    %16 = vector.broadcast %cst_7 : f32 to vector<32x1xf32>
    %17 = arith.addf %15, %16 : vector<32x1xf32>
    %18 = math.rsqrt %17 : vector<32x1xf32>
    %19 = vector.broadcast %6 : vector<32x1xf32> to vector<32x64xf32>
    %20 = arith.subf %0, %19 : vector<32x64xf32>
    %21 = vector.broadcast %18 : vector<32x1xf32> to vector<32x64xf32>
    %22 = arith.mulf %20, %21 : vector<32x64xf32>
    %23 = vector.broadcast %1 : vector<1x64xf32> to vector<32x64xf32>
    %24 = arith.mulf %22, %23 : vector<32x64xf32>
    %25 = vector.broadcast %2 : vector<1x64xf32> to vector<32x64xf32>
    %26 = arith.addf %24, %25 : vector<32x64xf32>
    %c0_8 = arith.constant 0 : index
    %c0_9 = arith.constant 0 : index
    %27 = vector.load %arg1[%c0_8, %c0_9] : memref<32x32xf32, #tpu.memory_space<vmem>>, vector<32x32xf32>
    %c0_10 = arith.constant 0 : index
    %c0_11 = arith.constant 0 : index
    %c0_12 = arith.constant 0 : index
    %28 = vector.load %arg2[%c0_10, %c0_11, %c0_12] : memref<2x64x384xbf16, #tpu.memory_space<vmem>>, vector<1x64x384xbf16>
    %29 = vector.shape_cast %28 : vector<1x64x384xbf16> to vector<64x384xbf16>
    %30 = vector.extract_strided_slice %29 {offsets = [0, 0], sizes = [64, 192], strides = [1, 1]} : vector<64x384xbf16> to vector<64x192xbf16>
    %31 = vector.extract_strided_slice %29 {offsets = [0, 192], sizes = [64, 64], strides = [1, 1]} : vector<64x384xbf16> to vector<64x64xbf16>
    %32 = vector.extract_strided_slice %29 {offsets = [0, 256], sizes = [64, 128], strides = [1, 1]} : vector<64x384xbf16> to vector<64x128xbf16>
    %c0_13 = arith.constant 0 : index
    %c0_14 = arith.constant 0 : index
    %c0_15 = arith.constant 0 : index
    %33 = vector.load %arg3[%c0_13, %c0_14, %c0_15] : memref<2x128x64xbf16, #tpu.memory_space<vmem>>, vector<1x128x64xbf16>
    %34 = vector.shape_cast %33 : vector<1x128x64xbf16> to vector<128x64xbf16>
    %c0_16 = arith.constant 0 : index
    %c0_17 = arith.constant 0 : index
    %c0_18 = arith.constant 0 : index
    %35 = vector.load %arg4[%c0_16, %c0_17, %c0_18] : memref<2x8x192xf32, #tpu.memory_space<vmem>>, vector<1x8x192xf32>
    %36 = vector.shape_cast %35 : vector<1x8x192xf32> to vector<8x192xf32>
    %37 = vector.extract_strided_slice %36 {offsets = [0, 0], sizes = [1, 192], strides = [1, 1]} : vector<8x192xf32> to vector<1x192xf32>
    %38 = vector.extract_strided_slice %36 {offsets = [1, 0], sizes = [1, 128], strides = [1, 1]} : vector<8x192xf32> to vector<1x128xf32>
    %39 = vector.extract_strided_slice %36 {offsets = [2, 0], sizes = [1, 64], strides = [1, 1]} : vector<8x192xf32> to vector<1x64xf32>
    %40 = vector.extract_strided_slice %36 {offsets = [3, 0], sizes = [1, 64], strides = [1, 1]} : vector<8x192xf32> to vector<1x64xf32>
    %41 = vector.extract_strided_slice %36 {offsets = [4, 0], sizes = [1, 64], strides = [1, 1]} : vector<8x192xf32> to vector<1x64xf32>
    %42 = vector.extract_strided_slice %36 {offsets = [5, 0], sizes = [1, 64], strides = [1, 1]} : vector<8x192xf32> to vector<1x64xf32>
    %43 = vector.extract_strided_slice %36 {offsets = [6, 0], sizes = [1, 64], strides = [1, 1]} : vector<8x192xf32> to vector<1x64xf32>
    %44 = vector.extract_strided_slice %36 {offsets = [7, 0], sizes = [1, 64], strides = [1, 1]} : vector<8x192xf32> to vector<1x64xf32>
    %45 = arith.truncf %26 : vector<32x64xf32> to vector<32x64xbf16>
    %cst_19 = arith.constant dense<0.000000e+00> : vector<32x192xf32>
    %46 = tpu.matmul %45, %30, %cst_19 {dimension_numbers = #tpu.dot_dimension_numbers<[1], [0], [0], [1], [0, 0, 1, 1], [], []>} : vector<32x64xbf16>, vector<64x192xbf16>, vector<32x192xf32> -> vector<32x192xf32>
    %47 = vector.broadcast %37 : vector<1x192xf32> to vector<32x192xf32>
    %48 = arith.addf %46, %47 : vector<32x192xf32>
    %49 = vector.extract_strided_slice %48 {offsets = [0, 0], sizes = [32, 32], strides = [1, 1]} : vector<32x192xf32> to vector<32x32xf32>
    %50 = vector.extract_strided_slice %48 {offsets = [0, 64], sizes = [32, 32], strides = [1, 1]} : vector<32x192xf32> to vector<32x32xf32>
    %51 = vector.extract_strided_slice %48 {offsets = [0, 128], sizes = [32, 32], strides = [1, 1]} : vector<32x192xf32> to vector<32x32xf32>
    %cst_20 = arith.constant dense<0.000000e+00> : vector<32x32xf32>
    %52 = tpu.matmul %49, %50, %cst_20 {dimension_numbers = #tpu.dot_dimension_numbers<[1], [1], [0], [0], [0, 0, 1, 0], [], []>} : vector<32x32xf32>, vector<32x32xf32>, vector<32x32xf32> -> vector<32x32xf32>
    %cst_21 = arith.constant 0.176776692 : f32
    %53 = vector.broadcast %cst_21 : f32 to vector<32x32xf32>
    %54 = arith.mulf %52, %53 : vector<32x32xf32>
    %55 = arith.addf %54, %27 : vector<32x32xf32>
    %cst_22 = arith.constant dense<0xFF800000> : vector<32xf32>
    %56 = vector.multi_reduction <maximumf>, %55, %cst_22 [1] : vector<32x32xf32> to vector<32xf32>
    %57 = vector.shape_cast %56 : vector<32xf32> to vector<32x1xf32>
    %58 = vector.broadcast %57 : vector<32x1xf32> to vector<32x32xf32>
    %59 = arith.subf %55, %58 : vector<32x32xf32>
    %60 = math.exp %59 : vector<32x32xf32>
    %cst_23 = arith.constant dense<0.000000e+00> : vector<32xf32>
    %61 = vector.multi_reduction <add>, %60, %cst_23 [1] : vector<32x32xf32> to vector<32xf32>
    %62 = vector.shape_cast %61 : vector<32xf32> to vector<32x1xf32>
    %63 = vector.broadcast %62 : vector<32x1xf32> to vector<32x32xf32>
    %64 = arith.divf %60, %63 : vector<32x32xf32>
    %cst_24 = arith.constant dense<0.000000e+00> : vector<32x32xf32>
    %65 = tpu.matmul %64, %51, %cst_24 {dimension_numbers = #tpu.dot_dimension_numbers<[1], [0], [0], [1], [0, 0, 1, 1], [], []>} : vector<32x32xf32>, vector<32x32xf32>, vector<32x32xf32> -> vector<32x32xf32>
    %66 = vector.extract_strided_slice %48 {offsets = [0, 32], sizes = [32, 32], strides = [1, 1]} : vector<32x192xf32> to vector<32x32xf32>
    %67 = vector.extract_strided_slice %48 {offsets = [0, 96], sizes = [32, 32], strides = [1, 1]} : vector<32x192xf32> to vector<32x32xf32>
    %68 = vector.extract_strided_slice %48 {offsets = [0, 160], sizes = [32, 32], strides = [1, 1]} : vector<32x192xf32> to vector<32x32xf32>
    %cst_25 = arith.constant dense<0.000000e+00> : vector<32x32xf32>
    %69 = tpu.matmul %66, %67, %cst_25 {dimension_numbers = #tpu.dot_dimension_numbers<[1], [1], [0], [0], [0, 0, 1, 0], [], []>} : vector<32x32xf32>, vector<32x32xf32>, vector<32x32xf32> -> vector<32x32xf32>
    %cst_26 = arith.constant 0.176776692 : f32
    %70 = vector.broadcast %cst_26 : f32 to vector<32x32xf32>
    %71 = arith.mulf %69, %70 : vector<32x32xf32>
    %72 = arith.addf %71, %27 : vector<32x32xf32>
    %cst_27 = arith.constant dense<0xFF800000> : vector<32xf32>
    %73 = vector.multi_reduction <maximumf>, %72, %cst_27 [1] : vector<32x32xf32> to vector<32xf32>
    %74 = vector.shape_cast %73 : vector<32xf32> to vector<32x1xf32>
    %75 = vector.broadcast %74 : vector<32x1xf32> to vector<32x32xf32>
    %76 = arith.subf %72, %75 : vector<32x32xf32>
    %77 = math.exp %76 : vector<32x32xf32>
    %cst_28 = arith.constant dense<0.000000e+00> : vector<32xf32>
    %78 = vector.multi_reduction <add>, %77, %cst_28 [1] : vector<32x32xf32> to vector<32xf32>
    %79 = vector.shape_cast %78 : vector<32xf32> to vector<32x1xf32>
    %80 = vector.broadcast %79 : vector<32x1xf32> to vector<32x32xf32>
    %81 = arith.divf %77, %80 : vector<32x32xf32>
    %cst_29 = arith.constant dense<0.000000e+00> : vector<32x32xf32>
    %82 = tpu.matmul %81, %68, %cst_29 {dimension_numbers = #tpu.dot_dimension_numbers<[1], [0], [0], [1], [0, 0, 1, 1], [], []>} : vector<32x32xf32>, vector<32x32xf32>, vector<32x32xf32> -> vector<32x32xf32>
    %83 = tpu.concatenate %65, %82 in 1 : vector<32x32xf32>, vector<32x32xf32> -> vector<32x64xf32>
    %84 = arith.truncf %83 : vector<32x64xf32> to vector<32x64xbf16>
    %cst_30 = arith.constant dense<0.000000e+00> : vector<32x64xf32>
    %85 = tpu.matmul %84, %31, %cst_30 {dimension_numbers = #tpu.dot_dimension_numbers<[1], [0], [0], [1], [0, 0, 1, 1], [], []>} : vector<32x64xbf16>, vector<64x64xbf16>, vector<32x64xf32> -> vector<32x64xf32>
    %86 = vector.broadcast %39 : vector<1x64xf32> to vector<32x64xf32>
    %87 = arith.addf %85, %86 : vector<32x64xf32>
    %88 = arith.addf %87, %26 : vector<32x64xf32>
    %cst_31 = arith.constant dense<0.000000e+00> : vector<32xf32>
    %89 = vector.multi_reduction <add>, %88, %cst_31 [1] : vector<32x64xf32> to vector<32xf32>
    %90 = vector.shape_cast %89 : vector<32xf32> to vector<32x1xf32>
    %cst_32 = arith.constant 6.400000e+01 : f32
    %91 = vector.broadcast %cst_32 : f32 to vector<32x1xf32>
    %92 = arith.divf %90, %91 : vector<32x1xf32>
    %93 = vector.broadcast %92 : vector<32x1xf32> to vector<32x64xf32>
    %94 = arith.subf %88, %93 : vector<32x64xf32>
    %95 = vector.broadcast %92 : vector<32x1xf32> to vector<32x64xf32>
    %96 = arith.subf %88, %95 : vector<32x64xf32>
    %97 = arith.mulf %94, %96 : vector<32x64xf32>
    %cst_33 = arith.constant dense<0.000000e+00> : vector<32xf32>
    %98 = vector.multi_reduction <add>, %97, %cst_33 [1] : vector<32x64xf32> to vector<32xf32>
    %99 = vector.shape_cast %98 : vector<32xf32> to vector<32x1xf32>
    %cst_34 = arith.constant 6.400000e+01 : f32
    %100 = vector.broadcast %cst_34 : f32 to vector<32x1xf32>
    %101 = arith.divf %99, %100 : vector<32x1xf32>
    %cst_35 = arith.constant 9.99999996E-13 : f32
    %102 = vector.broadcast %cst_35 : f32 to vector<32x1xf32>
    %103 = arith.addf %101, %102 : vector<32x1xf32>
    %104 = math.rsqrt %103 : vector<32x1xf32>
    %105 = vector.broadcast %92 : vector<32x1xf32> to vector<32x64xf32>
    %106 = arith.subf %88, %105 : vector<32x64xf32>
    %107 = vector.broadcast %104 : vector<32x1xf32> to vector<32x64xf32>
    %108 = arith.mulf %106, %107 : vector<32x64xf32>
    %109 = vector.broadcast %40 : vector<1x64xf32> to vector<32x64xf32>
    %110 = arith.mulf %108, %109 : vector<32x64xf32>
    %111 = vector.broadcast %41 : vector<1x64xf32> to vector<32x64xf32>
    %112 = arith.addf %110, %111 : vector<32x64xf32>
    %113 = arith.truncf %112 : vector<32x64xf32> to vector<32x64xbf16>
    %cst_36 = arith.constant dense<0.000000e+00> : vector<32x128xf32>
    %114 = tpu.matmul %113, %32, %cst_36 {dimension_numbers = #tpu.dot_dimension_numbers<[1], [0], [0], [1], [0, 0, 1, 1], [], []>} : vector<32x64xbf16>, vector<64x128xbf16>, vector<32x128xf32> -> vector<32x128xf32>
    %115 = vector.broadcast %38 : vector<1x128xf32> to vector<32x128xf32>
    %116 = arith.addf %114, %115 : vector<32x128xf32>
    %cst_37 = arith.constant 5.000000e-01 : f32
    %117 = vector.broadcast %cst_37 : f32 to vector<32x128xf32>
    %118 = arith.mulf %117, %116 : vector<32x128xf32>
    %cst_38 = arith.constant 4.471500e-02 : f32
    %119 = vector.broadcast %cst_38 : f32 to vector<32x128xf32>
    %120 = arith.mulf %119, %116 : vector<32x128xf32>
    %121 = arith.mulf %120, %116 : vector<32x128xf32>
    %122 = arith.mulf %121, %116 : vector<32x128xf32>
    %123 = arith.addf %116, %122 : vector<32x128xf32>
    %cst_39 = arith.constant 0.797884583 : f32
    %124 = vector.broadcast %cst_39 : f32 to vector<32x128xf32>
    %125 = arith.mulf %124, %123 : vector<32x128xf32>
    %126 = math.tanh %125 : vector<32x128xf32>
    %cst_40 = arith.constant 1.000000e+00 : f32
    %127 = vector.broadcast %cst_40 : f32 to vector<32x128xf32>
    %128 = arith.addf %127, %126 : vector<32x128xf32>
    %129 = arith.mulf %118, %128 : vector<32x128xf32>
    %130 = arith.truncf %129 : vector<32x128xf32> to vector<32x128xbf16>
    %cst_41 = arith.constant dense<0.000000e+00> : vector<32x64xf32>
    %131 = tpu.matmul %130, %34, %cst_41 {dimension_numbers = #tpu.dot_dimension_numbers<[1], [0], [0], [1], [0, 0, 1, 1], [], []>} : vector<32x128xbf16>, vector<128x64xbf16>, vector<32x64xf32> -> vector<32x64xf32>
    %132 = vector.broadcast %42 : vector<1x64xf32> to vector<32x64xf32>
    %133 = arith.addf %131, %132 : vector<32x64xf32>
    %134 = arith.addf %133, %112 : vector<32x64xf32>
    %cst_42 = arith.constant dense<0.000000e+00> : vector<32xf32>
    %135 = vector.multi_reduction <add>, %134, %cst_42 [1] : vector<32x64xf32> to vector<32xf32>
    %136 = vector.shape_cast %135 : vector<32xf32> to vector<32x1xf32>
    %cst_43 = arith.constant 6.400000e+01 : f32
    %137 = vector.broadcast %cst_43 : f32 to vector<32x1xf32>
    %138 = arith.divf %136, %137 : vector<32x1xf32>
    %139 = vector.broadcast %138 : vector<32x1xf32> to vector<32x64xf32>
    %140 = arith.subf %134, %139 : vector<32x64xf32>
    %141 = vector.broadcast %138 : vector<32x1xf32> to vector<32x64xf32>
    %142 = arith.subf %134, %141 : vector<32x64xf32>
    %143 = arith.mulf %140, %142 : vector<32x64xf32>
    %cst_44 = arith.constant dense<0.000000e+00> : vector<32xf32>
    %144 = vector.multi_reduction <add>, %143, %cst_44 [1] : vector<32x64xf32> to vector<32xf32>
    %145 = vector.shape_cast %144 : vector<32xf32> to vector<32x1xf32>
    %cst_45 = arith.constant 6.400000e+01 : f32
    %146 = vector.broadcast %cst_45 : f32 to vector<32x1xf32>
    %147 = arith.divf %145, %146 : vector<32x1xf32>
    %cst_46 = arith.constant 9.99999996E-13 : f32
    %148 = vector.broadcast %cst_46 : f32 to vector<32x1xf32>
    %149 = arith.addf %147, %148 : vector<32x1xf32>
    %150 = math.rsqrt %149 : vector<32x1xf32>
    %151 = vector.broadcast %138 : vector<32x1xf32> to vector<32x64xf32>
    %152 = arith.subf %134, %151 : vector<32x64xf32>
    %153 = vector.broadcast %150 : vector<32x1xf32> to vector<32x64xf32>
    %154 = arith.mulf %152, %153 : vector<32x64xf32>
    %155 = vector.broadcast %43 : vector<1x64xf32> to vector<32x64xf32>
    %156 = arith.mulf %154, %155 : vector<32x64xf32>
    %157 = vector.broadcast %44 : vector<1x64xf32> to vector<32x64xf32>
    %158 = arith.addf %156, %157 : vector<32x64xf32>
    %c1_47 = arith.constant 1 : index
    %c0_48 = arith.constant 0 : index
    %c0_49 = arith.constant 0 : index
    %159 = vector.load %arg2[%c1_47, %c0_48, %c0_49] : memref<2x64x384xbf16, #tpu.memory_space<vmem>>, vector<1x64x384xbf16>
    %160 = vector.shape_cast %159 : vector<1x64x384xbf16> to vector<64x384xbf16>
    %161 = vector.extract_strided_slice %160 {offsets = [0, 0], sizes = [64, 192], strides = [1, 1]} : vector<64x384xbf16> to vector<64x192xbf16>
    %162 = vector.extract_strided_slice %160 {offsets = [0, 192], sizes = [64, 64], strides = [1, 1]} : vector<64x384xbf16> to vector<64x64xbf16>
    %163 = vector.extract_strided_slice %160 {offsets = [0, 256], sizes = [64, 128], strides = [1, 1]} : vector<64x384xbf16> to vector<64x128xbf16>
    %c1_50 = arith.constant 1 : index
    %c0_51 = arith.constant 0 : index
    %c0_52 = arith.constant 0 : index
    %164 = vector.load %arg3[%c1_50, %c0_51, %c0_52] : memref<2x128x64xbf16, #tpu.memory_space<vmem>>, vector<1x128x64xbf16>
    %165 = vector.shape_cast %164 : vector<1x128x64xbf16> to vector<128x64xbf16>
    %c1_53 = arith.constant 1 : index
    %c0_54 = arith.constant 0 : index
    %c0_55 = arith.constant 0 : index
    %166 = vector.load %arg4[%c1_53, %c0_54, %c0_55] : memref<2x8x192xf32, #tpu.memory_space<vmem>>, vector<1x8x192xf32>
    %167 = vector.shape_cast %166 : vector<1x8x192xf32> to vector<8x192xf32>
    %168 = vector.extract_strided_slice %167 {offsets = [0, 0], sizes = [1, 192], strides = [1, 1]} : vector<8x192xf32> to vector<1x192xf32>
    %169 = vector.extract_strided_slice %167 {offsets = [1, 0], sizes = [1, 128], strides = [1, 1]} : vector<8x192xf32> to vector<1x128xf32>
    %170 = vector.extract_strided_slice %167 {offsets = [2, 0], sizes = [1, 64], strides = [1, 1]} : vector<8x192xf32> to vector<1x64xf32>
    %171 = vector.extract_strided_slice %167 {offsets = [3, 0], sizes = [1, 64], strides = [1, 1]} : vector<8x192xf32> to vector<1x64xf32>
    %172 = vector.extract_strided_slice %167 {offsets = [4, 0], sizes = [1, 64], strides = [1, 1]} : vector<8x192xf32> to vector<1x64xf32>
    %173 = vector.extract_strided_slice %167 {offsets = [5, 0], sizes = [1, 64], strides = [1, 1]} : vector<8x192xf32> to vector<1x64xf32>
    %174 = vector.extract_strided_slice %167 {offsets = [6, 0], sizes = [1, 64], strides = [1, 1]} : vector<8x192xf32> to vector<1x64xf32>
    %175 = vector.extract_strided_slice %167 {offsets = [7, 0], sizes = [1, 64], strides = [1, 1]} : vector<8x192xf32> to vector<1x64xf32>
    %176 = arith.truncf %158 : vector<32x64xf32> to vector<32x64xbf16>
    %cst_56 = arith.constant dense<0.000000e+00> : vector<32x192xf32>
    %177 = tpu.matmul %176, %161, %cst_56 {dimension_numbers = #tpu.dot_dimension_numbers<[1], [0], [0], [1], [0, 0, 1, 1], [], []>} : vector<32x64xbf16>, vector<64x192xbf16>, vector<32x192xf32> -> vector<32x192xf32>
    %178 = vector.broadcast %168 : vector<1x192xf32> to vector<32x192xf32>
    %179 = arith.addf %177, %178 : vector<32x192xf32>
    %180 = vector.extract_strided_slice %179 {offsets = [0, 0], sizes = [32, 32], strides = [1, 1]} : vector<32x192xf32> to vector<32x32xf32>
    %181 = vector.extract_strided_slice %179 {offsets = [0, 64], sizes = [32, 32], strides = [1, 1]} : vector<32x192xf32> to vector<32x32xf32>
    %182 = vector.extract_strided_slice %179 {offsets = [0, 128], sizes = [32, 32], strides = [1, 1]} : vector<32x192xf32> to vector<32x32xf32>
    %cst_57 = arith.constant dense<0.000000e+00> : vector<32x32xf32>
    %183 = tpu.matmul %180, %181, %cst_57 {dimension_numbers = #tpu.dot_dimension_numbers<[1], [1], [0], [0], [0, 0, 1, 0], [], []>} : vector<32x32xf32>, vector<32x32xf32>, vector<32x32xf32> -> vector<32x32xf32>
    %cst_58 = arith.constant 0.176776692 : f32
    %184 = vector.broadcast %cst_58 : f32 to vector<32x32xf32>
    %185 = arith.mulf %183, %184 : vector<32x32xf32>
    %186 = arith.addf %185, %27 : vector<32x32xf32>
    %cst_59 = arith.constant dense<0xFF800000> : vector<32xf32>
    %187 = vector.multi_reduction <maximumf>, %186, %cst_59 [1] : vector<32x32xf32> to vector<32xf32>
    %188 = vector.shape_cast %187 : vector<32xf32> to vector<32x1xf32>
    %189 = vector.broadcast %188 : vector<32x1xf32> to vector<32x32xf32>
    %190 = arith.subf %186, %189 : vector<32x32xf32>
    %191 = math.exp %190 : vector<32x32xf32>
    %cst_60 = arith.constant dense<0.000000e+00> : vector<32xf32>
    %192 = vector.multi_reduction <add>, %191, %cst_60 [1] : vector<32x32xf32> to vector<32xf32>
    %193 = vector.shape_cast %192 : vector<32xf32> to vector<32x1xf32>
    %194 = vector.broadcast %193 : vector<32x1xf32> to vector<32x32xf32>
    %195 = arith.divf %191, %194 : vector<32x32xf32>
    %cst_61 = arith.constant dense<0.000000e+00> : vector<32x32xf32>
    %196 = tpu.matmul %195, %182, %cst_61 {dimension_numbers = #tpu.dot_dimension_numbers<[1], [0], [0], [1], [0, 0, 1, 1], [], []>} : vector<32x32xf32>, vector<32x32xf32>, vector<32x32xf32> -> vector<32x32xf32>
    %197 = vector.extract_strided_slice %179 {offsets = [0, 32], sizes = [32, 32], strides = [1, 1]} : vector<32x192xf32> to vector<32x32xf32>
    %198 = vector.extract_strided_slice %179 {offsets = [0, 96], sizes = [32, 32], strides = [1, 1]} : vector<32x192xf32> to vector<32x32xf32>
    %199 = vector.extract_strided_slice %179 {offsets = [0, 160], sizes = [32, 32], strides = [1, 1]} : vector<32x192xf32> to vector<32x32xf32>
    %cst_62 = arith.constant dense<0.000000e+00> : vector<32x32xf32>
    %200 = tpu.matmul %197, %198, %cst_62 {dimension_numbers = #tpu.dot_dimension_numbers<[1], [1], [0], [0], [0, 0, 1, 0], [], []>} : vector<32x32xf32>, vector<32x32xf32>, vector<32x32xf32> -> vector<32x32xf32>
    %cst_63 = arith.constant 0.176776692 : f32
    %201 = vector.broadcast %cst_63 : f32 to vector<32x32xf32>
    %202 = arith.mulf %200, %201 : vector<32x32xf32>
    %203 = arith.addf %202, %27 : vector<32x32xf32>
    %cst_64 = arith.constant dense<0xFF800000> : vector<32xf32>
    %204 = vector.multi_reduction <maximumf>, %203, %cst_64 [1] : vector<32x32xf32> to vector<32xf32>
    %205 = vector.shape_cast %204 : vector<32xf32> to vector<32x1xf32>
    %206 = vector.broadcast %205 : vector<32x1xf32> to vector<32x32xf32>
    %207 = arith.subf %203, %206 : vector<32x32xf32>
    %208 = math.exp %207 : vector<32x32xf32>
    %cst_65 = arith.constant dense<0.000000e+00> : vector<32xf32>
    %209 = vector.multi_reduction <add>, %208, %cst_65 [1] : vector<32x32xf32> to vector<32xf32>
    %210 = vector.shape_cast %209 : vector<32xf32> to vector<32x1xf32>
    %211 = vector.broadcast %210 : vector<32x1xf32> to vector<32x32xf32>
    %212 = arith.divf %208, %211 : vector<32x32xf32>
    %cst_66 = arith.constant dense<0.000000e+00> : vector<32x32xf32>
    %213 = tpu.matmul %212, %199, %cst_66 {dimension_numbers = #tpu.dot_dimension_numbers<[1], [0], [0], [1], [0, 0, 1, 1], [], []>} : vector<32x32xf32>, vector<32x32xf32>, vector<32x32xf32> -> vector<32x32xf32>
    %214 = tpu.concatenate %196, %213 in 1 : vector<32x32xf32>, vector<32x32xf32> -> vector<32x64xf32>
    %215 = arith.truncf %214 : vector<32x64xf32> to vector<32x64xbf16>
    %cst_67 = arith.constant dense<0.000000e+00> : vector<32x64xf32>
    %216 = tpu.matmul %215, %162, %cst_67 {dimension_numbers = #tpu.dot_dimension_numbers<[1], [0], [0], [1], [0, 0, 1, 1], [], []>} : vector<32x64xbf16>, vector<64x64xbf16>, vector<32x64xf32> -> vector<32x64xf32>
    %217 = vector.broadcast %170 : vector<1x64xf32> to vector<32x64xf32>
    %218 = arith.addf %216, %217 : vector<32x64xf32>
    %219 = arith.addf %218, %158 : vector<32x64xf32>
    %cst_68 = arith.constant dense<0.000000e+00> : vector<32xf32>
    %220 = vector.multi_reduction <add>, %219, %cst_68 [1] : vector<32x64xf32> to vector<32xf32>
    %221 = vector.shape_cast %220 : vector<32xf32> to vector<32x1xf32>
    %cst_69 = arith.constant 6.400000e+01 : f32
    %222 = vector.broadcast %cst_69 : f32 to vector<32x1xf32>
    %223 = arith.divf %221, %222 : vector<32x1xf32>
    %224 = vector.broadcast %223 : vector<32x1xf32> to vector<32x64xf32>
    %225 = arith.subf %219, %224 : vector<32x64xf32>
    %226 = vector.broadcast %223 : vector<32x1xf32> to vector<32x64xf32>
    %227 = arith.subf %219, %226 : vector<32x64xf32>
    %228 = arith.mulf %225, %227 : vector<32x64xf32>
    %cst_70 = arith.constant dense<0.000000e+00> : vector<32xf32>
    %229 = vector.multi_reduction <add>, %228, %cst_70 [1] : vector<32x64xf32> to vector<32xf32>
    %230 = vector.shape_cast %229 : vector<32xf32> to vector<32x1xf32>
    %cst_71 = arith.constant 6.400000e+01 : f32
    %231 = vector.broadcast %cst_71 : f32 to vector<32x1xf32>
    %232 = arith.divf %230, %231 : vector<32x1xf32>
    %cst_72 = arith.constant 9.99999996E-13 : f32
    %233 = vector.broadcast %cst_72 : f32 to vector<32x1xf32>
    %234 = arith.addf %232, %233 : vector<32x1xf32>
    %235 = math.rsqrt %234 : vector<32x1xf32>
    %236 = vector.broadcast %223 : vector<32x1xf32> to vector<32x64xf32>
    %237 = arith.subf %219, %236 : vector<32x64xf32>
    %238 = vector.broadcast %235 : vector<32x1xf32> to vector<32x64xf32>
    %239 = arith.mulf %237, %238 : vector<32x64xf32>
    %240 = vector.broadcast %171 : vector<1x64xf32> to vector<32x64xf32>
    %241 = arith.mulf %239, %240 : vector<32x64xf32>
    %242 = vector.broadcast %172 : vector<1x64xf32> to vector<32x64xf32>
    %243 = arith.addf %241, %242 : vector<32x64xf32>
    %244 = arith.truncf %243 : vector<32x64xf32> to vector<32x64xbf16>
    %cst_73 = arith.constant dense<0.000000e+00> : vector<32x128xf32>
    %245 = tpu.matmul %244, %163, %cst_73 {dimension_numbers = #tpu.dot_dimension_numbers<[1], [0], [0], [1], [0, 0, 1, 1], [], []>} : vector<32x64xbf16>, vector<64x128xbf16>, vector<32x128xf32> -> vector<32x128xf32>
    %246 = vector.broadcast %169 : vector<1x128xf32> to vector<32x128xf32>
    %247 = arith.addf %245, %246 : vector<32x128xf32>
    %cst_74 = arith.constant 5.000000e-01 : f32
    %248 = vector.broadcast %cst_74 : f32 to vector<32x128xf32>
    %249 = arith.mulf %248, %247 : vector<32x128xf32>
    %cst_75 = arith.constant 4.471500e-02 : f32
    %250 = vector.broadcast %cst_75 : f32 to vector<32x128xf32>
    %251 = arith.mulf %250, %247 : vector<32x128xf32>
    %252 = arith.mulf %251, %247 : vector<32x128xf32>
    %253 = arith.mulf %252, %247 : vector<32x128xf32>
    %254 = arith.addf %247, %253 : vector<32x128xf32>
    %cst_76 = arith.constant 0.797884583 : f32
    %255 = vector.broadcast %cst_76 : f32 to vector<32x128xf32>
    %256 = arith.mulf %255, %254 : vector<32x128xf32>
    %257 = math.tanh %256 : vector<32x128xf32>
    %cst_77 = arith.constant 1.000000e+00 : f32
    %258 = vector.broadcast %cst_77 : f32 to vector<32x128xf32>
    %259 = arith.addf %258, %257 : vector<32x128xf32>
    %260 = arith.mulf %249, %259 : vector<32x128xf32>
    %261 = arith.truncf %260 : vector<32x128xf32> to vector<32x128xbf16>
    %cst_78 = arith.constant dense<0.000000e+00> : vector<32x64xf32>
    %262 = tpu.matmul %261, %165, %cst_78 {dimension_numbers = #tpu.dot_dimension_numbers<[1], [0], [0], [1], [0, 0, 1, 1], [], []>} : vector<32x128xbf16>, vector<128x64xbf16>, vector<32x64xf32> -> vector<32x64xf32>
    %263 = vector.broadcast %173 : vector<1x64xf32> to vector<32x64xf32>
    %264 = arith.addf %262, %263 : vector<32x64xf32>
    %265 = arith.addf %264, %243 : vector<32x64xf32>
    %cst_79 = arith.constant dense<0.000000e+00> : vector<32xf32>
    %266 = vector.multi_reduction <add>, %265, %cst_79 [1] : vector<32x64xf32> to vector<32xf32>
    %267 = vector.shape_cast %266 : vector<32xf32> to vector<32x1xf32>
    %cst_80 = arith.constant 6.400000e+01 : f32
    %268 = vector.broadcast %cst_80 : f32 to vector<32x1xf32>
    %269 = arith.divf %267, %268 : vector<32x1xf32>
    %270 = vector.broadcast %269 : vector<32x1xf32> to vector<32x64xf32>
    %271 = arith.subf %265, %270 : vector<32x64xf32>
    %272 = vector.broadcast %269 : vector<32x1xf32> to vector<32x64xf32>
    %273 = arith.subf %265, %272 : vector<32x64xf32>
    %274 = arith.mulf %271, %273 : vector<32x64xf32>
    %cst_81 = arith.constant dense<0.000000e+00> : vector<32xf32>
    %275 = vector.multi_reduction <add>, %274, %cst_81 [1] : vector<32x64xf32> to vector<32xf32>
    %276 = vector.shape_cast %275 : vector<32xf32> to vector<32x1xf32>
    %cst_82 = arith.constant 6.400000e+01 : f32
    %277 = vector.broadcast %cst_82 : f32 to vector<32x1xf32>
    %278 = arith.divf %276, %277 : vector<32x1xf32>
    %cst_83 = arith.constant 9.99999996E-13 : f32
    %279 = vector.broadcast %cst_83 : f32 to vector<32x1xf32>
    %280 = arith.addf %278, %279 : vector<32x1xf32>
    %281 = math.rsqrt %280 : vector<32x1xf32>
    %282 = vector.broadcast %269 : vector<32x1xf32> to vector<32x64xf32>
    %283 = arith.subf %265, %282 : vector<32x64xf32>
    %284 = vector.broadcast %281 : vector<32x1xf32> to vector<32x64xf32>
    %285 = arith.mulf %283, %284 : vector<32x64xf32>
    %286 = vector.broadcast %174 : vector<1x64xf32> to vector<32x64xf32>
    %287 = arith.mulf %285, %286 : vector<32x64xf32>
    %288 = vector.broadcast %175 : vector<1x64xf32> to vector<32x64xf32>
    %289 = arith.addf %287, %288 : vector<32x64xf32>
    %c0_84 = arith.constant 0 : index
    %c0_85 = arith.constant 0 : index
    %290 = vector.load %arg7[%c0_84, %c0_85] : memref<32x64xf32, #tpu.memory_space<vmem>>, vector<32x64xf32>
    tpu.vector_store %arg7[%c0_84, %c0_85], %289 {strides = array<i32>} : memref<32x64xf32, #tpu.memory_space<vmem>>, vector<32x64xf32>,
    %291 = vector.extract_strided_slice %289 {offsets = [0, 0], sizes = [1, 64], strides = [1, 1]} : vector<32x64xf32> to vector<1x64xf32>
    %292 = vector.extract_strided_slice %289 {offsets = [16, 0], sizes = [1, 64], strides = [1, 1]} : vector<32x64xf32> to vector<1x64xf32>
    %293 = tpu.concatenate %291, %292 in 0 : vector<1x64xf32>, vector<1x64xf32> -> vector<2x64xf32>
    %294 = arith.truncf %293 : vector<2x64xf32> to vector<2x64xbf16>
    %c0_86 = arith.constant 0 : index
    %c0_87 = arith.constant 0 : index
    %295 = vector.load %arg6[%c0_86, %c0_87] : memref<64x64xbf16, #tpu.memory_space<vmem>>, vector<64x64xbf16>
    %cst_88 = arith.constant dense<0.000000e+00> : vector<2x64xf32>
    %296 = tpu.matmul %294, %295, %cst_88 {dimension_numbers = #tpu.dot_dimension_numbers<[1], [0], [0], [1], [0, 0, 1, 1], [], []>} : vector<2x64xbf16>, vector<64x64xbf16>, vector<2x64xf32> -> vector<2x64xf32>
    %c2 = arith.constant 2 : index
    %c0_89 = arith.constant 0 : index
    %297 = vector.load %arg5[%c2, %c0_89] : memref<3x64xf32, #tpu.memory_space<vmem>>, vector<1x64xf32>
    %298 = vector.broadcast %297 : vector<1x64xf32> to vector<2x64xf32>
    %299 = arith.addf %296, %298 : vector<2x64xf32>
    %300 = math.tanh %299 : vector<2x64xf32>
    %c0_90 = arith.constant 0 : index
    %c0_91 = arith.constant 0 : index
    %301 = vector.load %arg8[%c0_90, %c0_91] : memref<2x64xf32, #tpu.memory_space<vmem>>, vector<2x64xf32>
    tpu.vector_store %arg8[%c0_90, %c0_91], %300 {strides = array<i32>} : memref<2x64xf32, #tpu.memory_space<vmem>>, vector<2x64xf32>,
    return
  }
}

</mosaic_0001>

<bundles_post_ra>
// kernel: eq.8
= control target key start
LH: loop header
LB: loop body
LE: loop exit
PB: predicated region body
PF: predicated region fallthrough
CT: control target
= control target key end

     0   :  { %vm7_vm0 = vcmask 130048   ;;  %vm13_vm1 = vcmask 261248   ;;  %s39_s0 = inlined_call_operand.vmem [shape: s32[2,16], index: 0, kind: input, shape index: {}]   ;;  %s40_s1 = inlined_call_operand.vmem [shape: s32[32], index: 1, kind: output, shape index: {}]  }
   0x1   :  { %v4_v0 = vld [vmem:[%s39_s0] sm:$0x3]  ;;  %s22_s0 = smov 16  }
   0x2   :  { %5 = vst [vmem:[#allocation1] sm:$0x3] %v4_v0 }
   0x9   :  { %v10_v1 = vld [vmem:[#allocation1 + $0x1] sm:$0x1]   ;;  %v6_v2 = vld [vmem:[#allocation1] sm:$0x1]  }
   0xa   :  { %11 = vrot.lane.b32.xlu0 %v10_v1, %s22_s0  ;;  %8 = vst.msk [vmem:[#allocation0] sm:$0x1] %vm7_vm0, %v6_v2  }
  0x7c   :  { %v12_v3 = vpop.permute.xlu0 %11  }
  0x7d   :  { %14 = vst.msk [vmem:[#allocation0] sm:$0x1] %vm13_vm1, %v12_v3  }
  0x84   :  { %v18_v4 = vld [vmem:[#allocation0] sm:$0x1] }
  0x85   :  { %20 = vst [vmem:[%s40_s1] sm:$0x1] %v18_v4 }

// kernel: fashionfae_forward.1
= control target key start
LH: loop header
LB: loop body
LE: loop exit
PB: predicated region body
PF: predicated region fallthrough
CT: control target
= control target key end

     0   :  { %vm36_vm0 = vcmask 523264   ;;  %s4100_s0 = inlined_call_operand.vmem [shape: f32[32,64], index: 0, kind: input, shape index: {}]   ;;  %s4101_s1 = inlined_call_operand.vmem [shape: f32[32,32], index: 1, kind: input, shape index: {}]   ;;  %s4102_s2 = inlined_call_operand.vmem [shape: bf16[2,64,384], index: 2, kind: input, shape index: {}]   ;;  %s4103_s3 = inlined_call_operand.vmem [shape: bf16[2,128,64], index: 3, kind: input, shape index: {}]   ;;  %s4104_s4 = inlined_call_operand.vmem [shape: f32[2,8,192], index: 4, kind: input, shape index: {}]   ;;  %s4105_s5 = inlined_call_operand.vmem [shape: f32[3,64], index: 5, kind: input, shape index: {}]   ;;  %s4106_s6 = inlined_call_operand.vmem [shape: bf16[64,64], index: 6, kind: input, shape index: {}]   ;;  %s4107_s7 = inlined_call_operand.vmem [shape: f32[32,64], index: 7, kind: output, shape index: {0}]   ;;  %s4108_s8 = inlined_call_operand.hbm [shape: f32[2,64], index: 8, kind: output, shape index: {1}]  }
   0x1   :  { %v30_v0 = vld [vmem:[%s4100_s0] sm:$0xff]  ;;  %v32_v1 = vld [vmem:[%s4100_s0 + $0x10] sm:$0xff]  ;;  %v31_v2 = vld [vmem:[%s4100_s0 + $0x8] sm:$0xff] }
   0x2   :  { %v37_v3 = vsel %vm36_vm0, %v30_v0, 0.0  ;;  %v43_v4 = vsel %vm36_vm0, %v32_v1, 0.0  ;;  %v33_v5 = vld [vmem:[%s4100_s0 + $0x18] sm:$0xff]  ;;  %v40_v6 = vsel %vm36_vm0, %v31_v2, 0.0 }
   0x3   :  { %38 = vadd.xlane.f32.xlu0 %v37_v3  ;;  %44 = vadd.xlane.f32.xlu1 %v43_v4  ;;  %v46_v7 = vsel %vm36_vm0, %v33_v5, 0.0 }
   0x7   :  { %41 = vadd.xlane.f32.xlu0 %v40_v6  ;;  %47 = vadd.xlane.f32.xlu1 %v46_v7 }
   0x8   :  { %14 = vsyncpa [#allocation3], 0  ;;  %v3437_v28 = vld [vmem:[%s4102_s2 + $0x4] ss:$12 sps:$4 sm:$0xff]   ;;  %v3157_v29 = vld [vmem:[%s4102_s2] ss:$12 sps:$4 sm:$0xff]  }
   0x9   :  { %200 = vmatprep.subr.bf16.mxu0 %v3437_v28  ;;  %v3446_v30 = vld [vmem:[%s4102_s2 + $0x1c] ss:$12 sps:$4 sm:$0xff]   ;;  %v3160_v31 = vld [vmem:[%s4102_s2 + $0x18] ss:$12 sps:$4 sm:$0xff]   ;;  %v3455_v32 = vld [vmem:[%s4102_s2 + $0x34] ss:$12 sps:$4 sm:$0xff]  }
   0xa   :  { %201 = vmatpush1.bf16.msra.mxu0 %v3157_v29  ;;  %v3163_v33 = vld [vmem:[%s4102_s2 + $0x30] ss:$12 sps:$4 sm:$0xff]   ;;  %v3464_v34 = vld [vmem:[%s4102_s2 + $0x4c] ss:$12 sps:$4 sm:$0xff]   ;;  %v3166_v35 = vld [vmem:[%s4102_s2 + $0x48] ss:$12 sps:$4 sm:$0xff]  }
   0xb   :  { %202 = vmatprep.subr.bf16.mxu0 %v3446_v30  ;;  %v3358_v36 = vmov 0   ;;  %v2521_v51 = vld [vmem:[%s4105_s5] ss:$0 sm:$0xff]  ;;  %v2522_v56 = vld [vmem:[%s4105_s5 + $0x1] ss:$0 sm:$0xff]  ;;  %vm265_vm1 = vcmask 261120  }
   0xc   :  { %232 = vmatprep.mubr.bf16.mxu0 %v3358_v36  ;;  %s3359_s13 = smov 64   ;;  %s3360_s14 = smov 96   ;;  %vm3536_vm2 = vmpackc.low %vm265_vm1, %vm265_vm1  ;;  %vm3363_vm3 = vmmov 0   ;;  %vm2417_vm4 = vcmask 1040384   ;;  %vm2501_vm5 = vcmask 517120  }
   0xd   :  { %s3361_s15 = smov 32   ;;  %s3364_s26 = smov [#allocation2]  }
   0xe   :  { %203 = vmatpush1.bf16.msra.mxu0 %v3160_v31  ;;  %s2511_s27 = sshll.u32 %s3364_s26, 4  ;;  %s2512_s27 = int_to_ptr.vmem [resolvable:$true] %s2511_s27 }
   0xf   :  { %204 = vmatprep.subr.bf16.mxu0 %v3455_v32  ;;  %s3334_s28 = scalar_lea.vmem %s2512_s27, 32  ;;  %p3339_p1 = scmp.lt.s32.totalorder %s2512_s27, %s2512_s27 }
  0x10   :  { %p3335_p0 = scmp.ne.s32.totalorder %s2512_s27, %s3334_s28  ;;  %p3340_p2 = scmp.lt.s32.totalorder %s3334_s28, %s3334_s28 }
  0x12   :  { %205 = vmatpush1.bf16.msra.mxu0 %v3163_v33  ;;  %p3341_p3 = por %p3340_p2, %p3339_p1 }
  0x13   :  { %206 = vmatprep.subr.bf16.mxu0 %v3464_v34 }
  0x14   :  { %p3342_p4 = pnand %p3341_p3, %p3335_p0 }
  0x16   :  { %207 = vmatpush1.bf16.msra.mxu0 %v3166_v35 }
  0x90   :  { %v39_v8 = vpop.xlane.xlu0 %38  ;;  %v45_v9 = vpop.xlane.xlu1 %44 }
  0x91   :  { %v50_v10 = vmul.f32 0.015625, %v39_v8  ;;  %v52_v11 = vmul.f32 0.015625, %v45_v9  ;;  %v3501_v8 = vld [vmem:[%s4104_s4] sm:$0xff] }
  0x93   :  { %v54_v12 = vsub.f32 %v30_v0, %v50_v10  ;;  %v3426_v13 = vsub.f32 %v32_v1, %v52_v11  ;;  %v143_v10 = vld [vmem:[%s4104_s4 + $0x8] sm:$0xff] }
  0x94   :  { %v42_v14 = vpop.xlane.xlu0 %41  ;;  %v48_v15 = vpop.xlane.xlu1 %47 }
  0x95   :  { %v51_v16 = vmul.f32 0.015625, %v42_v14  ;;  %v53_v17 = vmul.f32 0.015625, %v48_v15  ;;  %v58_v18 = vmul.f32 %v54_v12, %v54_v12  ;;  %v60_v19 = vmul.f32 %v3426_v13, %v3426_v13 }
  0x97   :  { %v55_v20 = vsub.f32 %v31_v2, %v51_v16  ;;  %v57_v21 = vsub.f32 %v33_v5, %v53_v17  ;;  %v62_v22 = vsel %vm36_vm0, %v58_v18, 0.0  ;;  %v68_v23 = vsel %vm36_vm0, %v60_v19, 0.0 }
  0x98   :  { %63 = vadd.xlane.f32.xlu0 %v62_v22  ;;  %v146_v5 = vlaneseq }
  0x99   :  { %v59_v24 = vmul.f32 %v55_v20, %v55_v20  ;;  %v61_v25 = vmul.f32 %v57_v21, %v57_v21 }
  0x9a   :  { %v3493_v6 = vshrl.u32 %v146_v5, 7 }
  0x9b   :  { %v65_v26 = vsel %vm36_vm0, %v59_v24, 0.0  ;;  %v71_v27 = vsel %vm36_vm0, %v61_v25, 0.0 }
  0x9c   :  { %69 = vadd.xlane.f32.xlu0 %v68_v23  ;;  %66 = vadd.xlane.f32.xlu1 %v65_v26  ;;  %v3496_v7 = vsub.s32 0, %v3493_v6 }
  0x9e   :  { %v149_v9 = vrot.slane %v3501_v8, %v3496_v7 }
  0xa0   :  { %72 = vadd.xlane.f32.xlu1 %v71_v27 }
 0x125   :  { %v64_v37 = vpop.xlane.xlu0 %63 }
 0x126   :  { %v74_v38 = vmul.f32 0.015625, %v64_v37 }
 0x128   :  { %v78_v39 = vadd.f32 1e-12, %v74_v38 }
 0x129   :  { %v67_v40 = vpop.xlane.xlu1 %66  ;;  %v70_v41 = vpop.xlane.xlu0 %69 }
 0x12a   :  { %3207 = vrsqrt.f32 %v78_v39  ;;  %v75_v42 = vmul.f32 0.015625, %v67_v40  ;;  %v76_v43 = vmul.f32 0.015625, %v70_v41 }
 0x12c   :  { %v79_v44 = vadd.f32 1e-12, %v75_v42  ;;  %v80_v45 = vadd.f32 1e-12, %v76_v43 }
 0x12d   :  { %v73_v46 = vpop.xlane.xlu1 %72 }
 0x12e   :  { %3209 = vrsqrt.f32 %v79_v44  ;;  %v77_v47 = vmul.f32 0.015625, %v73_v46 }
 0x12f   :  { %3211 = vrsqrt.f32 %v80_v45 }
 0x130   :  { %v81_v48 = vadd.f32 1e-12, %v77_v47 }
 0x132   :  { %3213 = vrsqrt.f32 %v81_v48 }
 0x134   :  { %v3208_v49 = vpop.eup %3207 }
 0x135   :  { %v86_v50 = vmul.f32 %v3208_v49, %v54_v12  ;;  %v153_v12 = vrot.slane %v143_v10, %v3496_v7 }
 0x137   :  { %v94_v54 = vmul.f32 %v2521_v51, %v86_v50 }
 0x138   :  { %v3210_v52 = vpop.eup %3209 }
 0x139   :  { %v87_v53 = vmul.f32 %v3210_v52, %v55_v20  ;;  %v3212_v55 = vpop.eup %3211  ;;  %v3478_v61 = vadd.f32 %v2522_v56, %v94_v54 }
 0x13a   :  { %v88_v59 = vmul.f32 %v3212_v55, %v3426_v13 }
 0x13b   :  { %v95_v57 = vmul.f32 %v2521_v51, %v87_v53 }
 0x13c   :  { %v3214_v58 = vpop.eup %3213  ;;  %v96_v1 = vmul.f32 %v2521_v51, %v88_v59 }
 0x13d   :  { %v89_v60 = vmul.f32 %v3214_v58, %v57_v21  ;;  %v3480_v62 = vadd.f32 %v2522_v56, %v95_v57 }
 0x13e   :  { %v3488_v3 = vadd.f32 %v2522_v56, %v96_v1 }
 0x13f   :  { %v144_v63 = vpack.c.bf16 %v3480_v62, %v3478_v61  ;;  %v97_v0 = vmul.f32 %v2521_v51, %v89_v60 }
 0x141   :  { %2531 = vmatmul.mubr.msk.bf16.vlgmr.msra.gmra.mrb[0].mxu0 %vm36_vm0, %v144_v63  ;;  %v3486_v2 = vadd.f32 %v2522_v56, %v97_v0  ;;  %v107_v63 = vld [vmem:[%s4101_s1 + $0x8] sm:$0xff] }
 0x142   :  { %242 = vmatprep.mubr.bf16.mxu0 %v3358_v36 }
 0x143   :  { %v145_v4 = vpack.c.bf16 %v3486_v2, %v3488_v3 }
 0x149   :  { %2532 = vmatmul.mubr.msk.bf16.gmra.mrb[4].mxu0 %vm36_vm0, %v145_v4  ;;  %v106_v4 = vld [vmem:[%s4101_s1] sm:$0xff] }
 0x214   :  { %v234_v11 = vpop.f32.mrb[0].mxu0 }
 0x215   :  { %v235_v13 = vadd.f32 %v234_v11, %v149_v9  ;;  %v236_v14 = vpop.f32.mrb[1].mxu0 }
 0x216   :  { %v238_v15 = vpop.f32.mrb[2].mxu0  ;;  %v3510_v18 = vadd.f32 %v236_v14, %v153_v12 }
 0x217   :  { %v239_v16 = vadd.f32 %v238_v15, %v149_v9  ;;  %v240_v17 = vpop.f32.mrb[3].mxu0  ;;  %2784 = vmatprep.mubr.msk.f32.mxu1 %vm265_vm1, %v235_v13 }
 0x218   :  { %v3512_v19 = vadd.f32 %v240_v17, %v153_v12 }
 0x219   :  { %v3075_v20 = vpack.i.bf16 %v239_v16, %v235_v13 }
 0x21a   :  { %v3095_v21 = vpack.i.bf16 %v3512_v19, %v3510_v18  ;;  %v3000_v22 = vpack.c.bf16 %v3512_v19, %v3510_v18 }
 0x21b   :  { %3076 = vrot.lane.b32.xlu0 %v3075_v20, %s3359_s13 }
 0x21c   :  { %v244_v23 = vpop.f32.mrb[4].mxu0 }
 0x21d   :  { %v246_v24 = vpop.f32.mrb[5].mxu0  ;;  %v245_v26 = vadd.f32 %v244_v23, %v149_v9 }
 0x21e   :  { %v248_v25 = vpop.f32.mrb[6].mxu0  ;;  %v3520_v31 = vadd.f32 %v246_v24, %v153_v12 }
 0x21f   :  { %v249_v27 = vadd.f32 %v248_v25, %v149_v9  ;;  %516 = vrot.lane.b32.xlu0 %v235_v13, %s3360_s14  ;;  %v250_v29 = vpop.f32.mrb[7].mxu0 }
 0x220   :  { %v3522_v33 = vadd.f32 %v250_v29, %v153_v12  ;;  %v109_v12 = vld [vmem:[%s4101_s1 + $0x18] sm:$0xff] }
 0x221   :  { %v3080_v35 = vpack.i.bf16 %v249_v27, %v245_v26 }
 0x222   :  { %v3100_v37 = vpack.i.bf16 %v3522_v33, %v3520_v31  ;;  %v3004_v38 = vpack.c.bf16 %v3522_v33, %v3520_v31 }
 0x223   :  { %520 = vrot.lane.b32.xlu0 %v245_v26, %s3360_s14  ;;  %3081 = vrot.lane.b32.xlu1 %v3080_v35, %s3359_s13 }
 0x227   :  { %3086 = vrot.lane.b32.xlu1 %v3075_v20, %s3361_s15 }
 0x22b   :  { %3091 = vrot.lane.b32.xlu1 %v3080_v35, %s3361_s15 }
 0x22f   :  { %518 = vrot.lane.b32.xlu1 %v239_v16, %s3360_s14 }
 0x233   :  { %522 = vrot.lane.b32.xlu1 %v249_v27, %s3360_s14 }
 0x28d   :  { %v3077_v39 = vpop.permute.xlu0 %3076 }
 0x28e   :  { %v3079_v40 = vunpack.i.h.bf16 %v3077_v39  ;;  %v3078_v41 = vunpack.i.l.bf16 %v3077_v39 }
 0x290   :  { %v2988_v43 = vpack.c.bf16 %v3079_v40, %v3078_v41 }
 0x291   :  { %v517_v44 = vpop.permute.xlu0 %516 }
 0x292   :  { %2990 = vmatprep.subr.msk.bf16.mxu1 %vm3536_vm2, %v2988_v43  ;;  %2812 = vmatprep.mubr.msk.f32.mxu0 %vm265_vm1, %v517_v44 }
 0x293   :  { %2993 = vmatpush3.bf16.xpose.msk.msra.mxu1 %vm3536_vm2, %v2988_v43 }
 0x295   :  { %v3082_v45 = vpop.permute.xlu1 %3081  ;;  %v521_v58 = vpop.permute.xlu0 %520 }
 0x296   :  { %v3084_v46 = vunpack.i.h.bf16 %v3082_v45  ;;  %v3083_v47 = vunpack.i.l.bf16 %v3082_v45 }
 0x298   :  { %v2994_v48 = vpack.c.bf16 %v3084_v46, %v3083_v47 }
 0x299   :  { %v3087_v49 = vpop.permute.xlu1 %3086 }
 0x29a   :  { %v3089_v50 = vunpack.i.h.bf16 %v3087_v49  ;;  %v3088_v51 = vunpack.i.l.bf16 %v3087_v49  ;;  %2996 = vmatprep.subr.msk.bf16.mxu1 %vm3536_vm2, %v2994_v48 }
 0x29b   :  { %2999 = vmatpush3.bf16.xpose.msk.msra.mxu1 %vm3536_vm2, %v2994_v48 }
 0x29c   :  { %v3008_v52 = vpack.c.bf16 %v3089_v50, %v3088_v51  ;;  %3001 = vmatprep.subr.bf16.mxu1 %v3000_v22 }
 0x29d   :  { %v3092_v53 = vpop.permute.xlu1 %3091 }
 0x29e   :  { %v3094_v54 = vunpack.i.h.bf16 %v3092_v53  ;;  %v3093_v55 = vunpack.i.l.bf16 %v3092_v53  ;;  %3010 = vmatprep.subr.msk.bf16.mxu0 %vm3536_vm2, %v3008_v52 }
 0x29f   :  { %3013 = vmatpush3.bf16.xpose.msk.msra.mxu0 %vm3536_vm2, %v3008_v52 }
 0x2a0   :  { %v3014_v56 = vpack.c.bf16 %v3094_v54, %v3093_v55 }
 0x2a1   :  { %v519_v57 = vpop.permute.xlu1 %518 }
 0x2a2   :  { %2785 = vmatmul.mubr.msk.f32.vlgmr.msra.gmra.mrb[0].mxu1 %vm265_vm1, %v239_v16  ;;  %3016 = vmatprep.subr.msk.bf16.mxu0 %vm3536_vm2, %v3014_v56 }
 0x2a3   :  { %2787 = vmatprep.mubr.msk.f32.mxu1 %vm265_vm1, %v245_v26  ;;  %3003 = vmatpush3.bf16.msra.mxu1 %v3000_v22  ;;  %v108_v22 = vld [vmem:[%s4101_s1 + $0x10] sm:$0xff] }
 0x2a4   :  { %3005 = vmatprep.subr.bf16.mxu1 %v3004_v38 }
 0x2a5   :  { %v523_v59 = vpop.permute.xlu1 %522 }
 0x2a6   :  { %2788 = vmatmul.mubr.msk.f32.gmra.mrb[2].mxu1 %vm265_vm1, %v249_v27 }
 0x2a7   :  { %3007 = vmatpush3.bf16.msra.mxu1 %v3004_v38  ;;  %3019 = vmatpush3.bf16.xpose.msk.msra.mxu0 %vm3536_vm2, %v3014_v56 }
 0x2ae   :  { %2813 = vmatmul.mubr.msk.f32.vlgmr.msra.gmra.mrb[8].mxu0 %vm265_vm1, %v519_v57 }
 0x2af   :  { %2815 = vmatprep.mubr.msk.f32.mxu0 %vm265_vm1, %v521_v58 }
 0x2b2   :  { %2816 = vmatmul.mubr.msk.f32.gmra.mrb[10].mxu0 %vm265_vm1, %v523_v59 }
 0x375   :  { %v2786_v60 = vpop.f32.mrb[0].mxu1 }
 0x376   :  { %v368_v0 = vmul.f32 0.17677669, %v2786_v60  ;;  %v348_v1 = vpop.f32.mrb[1].mxu1 }
 0x377   :  { %v367_v5 = vmul.f32 0.17677669, %v348_v1 }
 0x378   :  { %v372_v9 = vadd.f32 %v368_v0, %v107_v63 }
 0x379   :  { %v2789_v10 = vpop.f32.mrb[2].mxu1  ;;  %v371_v11 = vadd.f32 %v367_v5, %v106_v4 }
 0x37a   :  { %v370_v13 = vmul.f32 0.17677669, %v2789_v10  ;;  %v358_v14 = vpop.f32.mrb[3].mxu1  ;;  %v378_v15 = vsel %vm265_vm1, %v372_v9, -inf }
 0x37b   :  { %v369_v16 = vmul.f32 0.17677669, %v358_v14  ;;  %379 = vmax.xlane.f32.xlu1 %v378_v15  ;;  %v375_v17 = vsel %vm265_vm1, %v371_v11, -inf }
 0x37c   :  { %376 = vmax.xlane.f32.xlu0 %v375_v17  ;;  %v374_v20 = vadd.f32 %v370_v13, %v109_v12 }
 0x37d   :  { %v373_v24 = vadd.f32 %v369_v16, %v108_v22 }
 0x37e   :  { %v384_v23 = vsel %vm265_vm1, %v374_v20, -inf }
 0x37f   :  { %v381_v35 = vsel %vm265_vm1, %v373_v24, -inf }
 0x380   :  { %385 = vmax.xlane.f32.xlu0 %v384_v23 }
 0x381   :  { %v2814_v25 = vpop.f32.mrb[8].mxu0 }
 0x382   :  { %v634_v26 = vmul.f32 0.17677669, %v2814_v25  ;;  %v614_v27 = vpop.f32.mrb[9].mxu0 }
 0x383   :  { %v633_v29 = vmul.f32 0.17677669, %v614_v27 }
 0x384   :  { %382 = vmax.xlane.f32.xlu0 %v381_v35  ;;  %v638_v38 = vadd.f32 %v634_v26, %v107_v63 }
 0x385   :  { %v2817_v39 = vpop.f32.mrb[10].mxu0  ;;  %v637_v40 = vadd.f32 %v633_v29, %v106_v4 }
 0x386   :  { %v636_v41 = vmul.f32 0.17677669, %v2817_v39  ;;  %v624_v43 = vpop.f32.mrb[11].mxu0  ;;  %v644_v44 = vsel %vm265_vm1, %v638_v38, -inf }
 0x387   :  { %v635_v45 = vmul.f32 0.17677669, %v624_v43  ;;  %645 = vmax.xlane.f32.xlu1 %v644_v44  ;;  %v641_v46 = vsel %vm265_vm1, %v637_v40, -inf }
 0x388   :  { %642 = vmax.xlane.f32.xlu0 %v641_v46  ;;  %v640_v47 = vadd.f32 %v636_v41, %v109_v12 }
 0x389   :  { %v639_v48 = vadd.f32 %v635_v45, %v108_v22 }
 0x38a   :  { %v650_v49 = vsel %vm265_vm1, %v640_v47, -inf }
 0x38b   :  { %651 = vmax.xlane.f32.xlu1 %v650_v49  ;;  %v647_v50 = vsel %vm265_vm1, %v639_v48, -inf }
 0x38c   :  { %648 = vmax.xlane.f32.xlu0 %v647_v50 }
 0x408   :  { %v380_v51 = vpop.xlane.xlu1 %379 }
 0x409   :  { %v388_v52 = vsub.f32 %v372_v9, %v380_v51  ;;  %v377_v53 = vpop.xlane.xlu0 %376 }
 0x40a   :  { %v387_v54 = vsub.f32 %v371_v11, %v377_v53 }
 0x40b   :  { %v393_v55 = vmul.f32 1.442695, %v388_v52 }
 0x40c   :  { %v391_v56 = vmul.f32 1.442695, %v387_v54 }
 0x40d   :  { %3215 = vpow2.f32 %v393_v55  ;;  %v386_v57 = vpop.xlane.xlu0 %385 }
 0x40e   :  { %3217 = vpow2.f32 %v391_v56  ;;  %v390_v59 = vsub.f32 %v374_v20, %v386_v57 }
 0x410   :  { %v397_v10 = vmul.f32 1.442695, %v390_v59 }
 0x411   :  { %v383_v58 = vpop.xlane.xlu0 %382 }
 0x412   :  { %v389_v60 = vsub.f32 %v373_v24, %v383_v58 }
 0x414   :  { %v646_v63 = vpop.xlane.xlu1 %645  ;;  %v395_v14 = vmul.f32 1.442695, %v389_v60 }
 0x415   :  { %v654_v0 = vsub.f32 %v638_v38, %v646_v63  ;;  %v643_v1 = vpop.xlane.xlu0 %642 }
 0x416   :  { %v653_v4 = vsub.f32 %v637_v40, %v643_v1 }
 0x417   :  { %v3216_v5 = vpop.eup %3215  ;;  %v659_v12 = vmul.f32 1.442695, %v654_v0 }
 0x418   :  { %v3218_v13 = vpop.eup %3217  ;;  %v657_v9 = vmul.f32 1.442695, %v653_v4  ;;  %v652_v15 = vpop.xlane.xlu1 %651  ;;  %v402_v11 = vsel %vm265_vm1, %v3216_v5, 0.0 }
 0x419   :  { %3219 = vpow2.f32 %v659_v12  ;;  %v656_v16 = vsub.f32 %v640_v47, %v652_v15  ;;  %403 = vadd.xlane.f32.xlu1 %v402_v11  ;;  %v649_v17 = vpop.xlane.xlu0 %648  ;;  %v399_v20 = vsel %vm265_vm1, %v3218_v13, 0.0 }
 0x41a   :  { %3221 = vpow2.f32 %v657_v9  ;;  %v655_v22 = vsub.f32 %v639_v48, %v649_v17  ;;  %400 = vadd.xlane.f32.xlu0 %v399_v20 }
 0x41b   :  { %3223 = vpow2.f32 %v397_v10  ;;  %v663_v23 = vmul.f32 1.442695, %v656_v16 }
 0x41c   :  { %3225 = vpow2.f32 %v395_v14  ;;  %v661_v24 = vmul.f32 1.442695, %v655_v22 }
 0x41d   :  { %3227 = vpow2.f32 %v663_v23 }
 0x41e   :  { %3229 = vpow2.f32 %v661_v24 }
 0x423   :  { %v3585_v25 = vpop.eup %3219 }
 0x424   :  { %v3222_v26 = vpop.eup %3221  ;;  %v668_v27 = vsel %vm265_vm1, %v3585_v25, 0.0 }
 0x425   :  { %v3224_v29 = vpop.eup %3223  ;;  %669 = vadd.xlane.f32.xlu1 %v668_v27  ;;  %v665_v35 = vsel %vm265_vm1, %v3222_v26, 0.0 }
 0x426   :  { %v3226_v38 = vpop.eup %3225  ;;  %666 = vadd.xlane.f32.xlu0 %v665_v35  ;;  %v408_v39 = vsel %vm265_vm1, %v3224_v29, 0.0 }
 0x427   :  { %v3591_v40 = vpop.eup %3227  ;;  %v405_v41 = vsel %vm265_vm1, %v3226_v38, 0.0 }
 0x428   :  { %v3230_v43 = vpop.eup %3229  ;;  %v674_v44 = vsel %vm265_vm1, %v3591_v40, 0.0 }
 0x429   :  { %409 = vadd.xlane.f32.xlu1 %v408_v39  ;;  %v671_v45 = vsel %vm265_vm1, %v3230_v43, 0.0 }
 0x42a   :  { %406 = vadd.xlane.f32.xlu0 %v405_v41 }
 0x42d   :  { %675 = vadd.xlane.f32.xlu1 %v674_v44 }
 0x42e   :  { %672 = vadd.xlane.f32.xlu0 %v671_v45 }
 0x43e   :  { %3101 = vrot.lane.b32.xlu1 %v3100_v37, %s3360_s14 }
 0x442   :  { %824 = vrot.lane.b32.xlu1 %v3437_v28, %s3359_s13 }
 0x444   :  { %3096 = vrot.lane.b32.xlu0 %v3095_v21, %s3360_s14 }
 0x446   :  { %826 = vrot.lane.b32.xlu1 %v3446_v30, %s3359_s13 }
 0x448   :  { %828 = vrot.lane.b32.xlu0 %v3455_v32, %s3359_s13 }
 0x44c   :  { %830 = vrot.lane.b32.xlu0 %v3464_v34, %s3359_s13 }
 0x4a6   :  { %v404_v46 = vpop.xlane.xlu1 %403 }
 0x4a7   :  { %3231 = vrcp.f32 %v404_v46  ;;  %v401_v31 = vpop.xlane.xlu0 %400 }
 0x4a8   :  { %3233 = vrcp.f32 %v401_v31 }
 0x4b1   :  { %v3232_v33 = vpop.eup %3231 }
 0x4b2   :  { %v3234_v28 = vpop.eup %3233  ;;  %v670_v37 = vpop.xlane.xlu1 %669  ;;  %v414_v18 = vmul.f32 %v3232_v33, %v3216_v5 }
 0x4b3   :  { %v667_v47 = vpop.xlane.xlu0 %666  ;;  %v412_v48 = vmul.f32 %v3234_v28, %v3218_v13  ;;  %v822_v28 = vsub.s32 2, %v3493_v6 }
 0x4b4   :  { %3235 = vrcp.f32 %v667_v47 }
 0x4b5   :  { %2798 = vmatprep.mubr.msk.f32.mxu1 %vm265_vm1, %v412_v48 }
 0x4b6   :  { %v410_v30 = vpop.xlane.xlu1 %409  ;;  %2799 = vmatmul.mubr.msk.f32.vlgmr.msra.gmra.mrb[4].mxu1 %vm265_vm1, %v414_v18 }
 0x4b7   :  { %3237 = vrcp.f32 %v410_v30  ;;  %v407_v32 = vpop.xlane.xlu0 %406 }
 0x4b8   :  { %3239 = vrcp.f32 %v407_v32 }
 0x4b9   :  { %3241 = vrcp.f32 %v670_v37  ;;  %v823_v37 = vrot.slane %v3501_v8, %v822_v28 }
 0x4ba   :  { %v676_v34 = vpop.xlane.xlu1 %675 }
 0x4bb   :  { %v673_v19 = vpop.xlane.xlu0 %672 }
 0x4bc   :  { %3243 = vrcp.f32 %v673_v19 }
 0x4bd   :  { %3245 = vrcp.f32 %v676_v34 }
 0x4be   :  { %v3102_v21 = vpop.permute.xlu1 %3101  ;;  %v3236_v50 = vpop.eup %3235 }
 0x4bf   :  { %v3097_v49 = vpop.permute.xlu0 %3096  ;;  %v3104_v51 = vunpack.i.h.bf16 %v3102_v21  ;;  %v3103_v52 = vunpack.i.l.bf16 %v3102_v21  ;;  %v678_v63 = vmul.f32 %v3236_v50, %v3222_v26 }
 0x4c0   :  { %v3099_v53 = vunpack.i.h.bf16 %v3097_v49  ;;  %v3098_v54 = vunpack.i.l.bf16 %v3097_v49 }
 0x4c1   :  { %v3238_v55 = vpop.eup %3237  ;;  %v3024_v59 = vpack.c.bf16 %v3104_v51, %v3103_v52 }
 0x4c2   :  { %v3240_v56 = vpop.eup %3239  ;;  %v3020_v57 = vpack.c.bf16 %v3099_v53, %v3098_v54  ;;  %v418_v60 = vmul.f32 %v3238_v55, %v3224_v29  ;;  %v825_v13 = vpop.permute.xlu1 %824 }
 0x4c3   :  { %v416_v58 = vmul.f32 %v3240_v56, %v3226_v38  ;;  %v3242_v0 = vpop.eup %3241  ;;  %2832 = vmatprep.subr.bf16.mxu0 %v825_v13  ;;  %v829_v9 = vpop.permute.xlu0 %828 }
 0x4c4   :  { %3021 = vmatprep.subr.bf16.mxu1 %v3020_v57  ;;  %v680_v4 = vmul.f32 %v3242_v0, %v3585_v25  ;;  %2833 = vmatpush3.bf16.msra.mxu0 %v825_v13 }
 0x4c5   :  { %2801 = vmatprep.mubr.msk.f32.mxu1 %vm265_vm1, %v416_v58  ;;  %3023 = vmatpush3.bf16.msra.mxu1 %v3020_v57 }
 0x4c6   :  { %2802 = vmatmul.mubr.msk.f32.gmra.mrb[6].mxu1 %vm265_vm1, %v418_v60  ;;  %3025 = vmatprep.subr.bf16.mxu1 %v3024_v59  ;;  %v3244_v1 = vpop.eup %3243  ;;  %v827_v14 = vpop.permute.xlu1 %826 }
 0x4c7   :  { %2826 = vmatprep.mubr.msk.f32.mxu1 %vm265_vm1, %v678_v63  ;;  %v3246_v5 = vpop.eup %3245  ;;  %v682_v10 = vmul.f32 %v3244_v1, %v3230_v43  ;;  %2834 = vmatprep.subr.bf16.mxu0 %v827_v14  ;;  %v831_v17 = vpop.permute.xlu0 %830 }
 0x4c8   :  { %v684_v12 = vmul.f32 %v3246_v5, %v3591_v40  ;;  %2835 = vmatpush3.bf16.msra.mxu0 %v827_v14 }
 0x4c9   :  { %3027 = vmatpush3.bf16.msra.mxu1 %v3024_v59  ;;  %2836 = vmatprep.subr.bf16.mxu0 %v829_v9 }
 0x4cc   :  { %2827 = vmatmul.mubr.msk.f32.vlgmr.msra.gmra.mrb[8].mxu1 %vm265_vm1, %v680_v4  ;;  %2837 = vmatpush3.bf16.msra.mxu0 %v829_v9 }
 0x4cd   :  { %2829 = vmatprep.mubr.msk.f32.mxu1 %vm265_vm1, %v682_v10  ;;  %2838 = vmatprep.subr.bf16.mxu0 %v831_v17 }
 0x4d0   :  { %2830 = vmatmul.mubr.msk.f32.gmra.mrb[10].mxu1 %vm265_vm1, %v684_v12  ;;  %2839 = vmatpush3.bf16.msra.mxu0 %v831_v17  ;;  %v3168_v17 = vld [vmem:[%s4102_s2 + $0x20] ss:$12 sps:$4 sm:$0xff]  }
 0x589   :  { %v2800_v15 = vpop.f32.mrb[4].mxu1 }
 0x58a   :  { %v497_v11 = vpop.f32.mrb[5].mxu1 }
 0x599   :  { %v2803_v16 = vpop.f32.mrb[6].mxu1 }
 0x59a   :  { %v507_v20 = vpop.f32.mrb[7].mxu1 }
 0x59f   :  { %v2828_v22 = vpop.f32.mrb[8].mxu1 }
 0x5a0   :  { %v779_v23 = vpop.f32.mrb[9].mxu1 }
 0x5a1   :  { %v3105_v24 = vpack.i.bf16 %v2828_v22, %v779_v23  ;;  %v3170_v22 = vld [vmem:[%s4102_s2 + $0x50] ss:$12 sps:$4 sm:$0xff]  }
 0x5a3   :  { %3106 = vrot.lane.b32.xlu1 %v3105_v24, %s3361_s15  ;;  %v2831_v25 = vpop.f32.mrb[10].mxu1 }
 0x5a4   :  { %v789_v26 = vpop.f32.mrb[11].mxu1 }
 0x5a5   :  { %v3110_v27 = vpack.i.bf16 %v2831_v25, %v789_v26 }
 0x5a7   :  { %3111 = vrot.lane.b32.xlu1 %v3110_v27, %s3361_s15 }
 0x615   :  { %v3107_v29 = vpop.permute.xlu1 %3106 }
 0x616   :  { %v3109_v35 = vunpack.i.h.bf16 %v3107_v29  ;;  %v3108_v38 = vunpack.i.l.bf16 %v3107_v29 }
 0x618   :  { %v815_v39 = vsel %vm265_vm1, %v2800_v15, %v3109_v35  ;;  %v814_v40 = vsel %vm265_vm1, %v497_v11, %v3108_v38 }
 0x619   :  { %v818_v41 = vpack.c.bf16 %v815_v39, %v814_v40  ;;  %v3112_v43 = vpop.permute.xlu1 %3111 }
 0x61a   :  { %v3114_v44 = vunpack.i.h.bf16 %v3112_v43  ;;  %v3113_v45 = vunpack.i.l.bf16 %v3112_v43  ;;  %v949_v43 = vsub.s32 3, %v3493_v6 }
 0x61b   :  { %2840 = vmatprep.mubr.msk.bf16.mxu0 %vm36_vm0, %v818_v41 }
 0x61c   :  { %v817_v46 = vsel %vm265_vm1, %v2803_v16, %v3114_v44  ;;  %v816_v31 = vsel %vm265_vm1, %v507_v20, %v3113_v45  ;;  %v3167_v16 = vld [vmem:[%s4102_s2 + $0x8] ss:$12 sps:$4 sm:$0xff]   ;;  %v3169_v20 = vld [vmem:[%s4102_s2 + $0x38] ss:$12 sps:$4 sm:$0xff]   ;;  %v950_v45 = vrot.slane %v3501_v8, %v949_v43 }
 0x61d   :  { %v819_v33 = vpack.c.bf16 %v817_v46, %v816_v31  ;;  %2844 = vmatprep.subr.bf16.mxu1 %v3167_v16  ;;  %v957_v46 = vsub.s32 4, %v3493_v6 }
 0x61e   :  { %2845 = vmatpush3.bf16.msra.mxu1 %v3167_v16 }
 0x61f   :  { %2841 = vmatmul.mubr.msk.bf16.vlgmr.msra.gmra.mrb[12].mxu0 %vm36_vm0, %v819_v33  ;;  %2846 = vmatprep.subr.bf16.mxu1 %v3168_v17 }
 0x622   :  { %2847 = vmatpush3.bf16.msra.mxu1 %v3168_v17 }
 0x623   :  { %2848 = vmatprep.subr.bf16.mxu1 %v3169_v20 }
 0x626   :  { %2849 = vmatpush3.bf16.msra.mxu1 %v3169_v20 }
 0x627   :  { %2850 = vmatprep.subr.bf16.mxu1 %v3170_v22 }
 0x62a   :  { %2851 = vmatpush3.bf16.msra.mxu1 %v3170_v22 }
 0x6f2   :  { %v2842_v47 = vpop.f32.mrb[12].mxu0 }
 0x6f3   :  { %v876_v48 = vpop.f32.mrb[13].mxu0  ;;  %v885_v18 = vadd.f32 %v2842_v47, %v823_v37 }
 0x6f4   :  { %v877_v30 = vadd.f32 %v876_v48, %v823_v37  ;;  %v2843_v32 = vpop.f32.mrb[14].mxu0  ;;  %v958_v48 = vrot.slane %v3501_v8, %v957_v46 }
 0x6f5   :  { %v879_v34 = vpop.f32.mrb[15].mxu0  ;;  %v888_v49 = vadd.f32 %v2843_v32, %v823_v37  ;;  %v893_v52 = vadd.f32 %v885_v18, %v3488_v3 }
 0x6f6   :  { %v880_v19 = vadd.f32 %v879_v34, %v823_v37  ;;  %v891_v21 = vadd.f32 %v877_v30, %v3478_v61 }
 0x6f7   :  { %v901_v54 = vsel %vm36_vm0, %v893_v52, 0.0  ;;  %v894_v55 = vadd.f32 %v888_v49, %v3486_v2 }
 0x6f8   :  { %v895_v50 = vsel %vm36_vm0, %v891_v21, 0.0  ;;  %v892_v51 = vadd.f32 %v880_v19, %v3480_v62 }
 0x6f9   :  { %896 = vadd.xlane.f32.xlu0 %v895_v50  ;;  %v904_v56 = vsel %vm36_vm0, %v894_v55, 0.0 }
 0x6fa   :  { %v898_v53 = vsel %vm36_vm0, %v892_v51, 0.0 }
 0x6fb   :  { %899 = vadd.xlane.f32.xlu1 %v898_v53 }
 0x6fd   :  { %902 = vadd.xlane.f32.xlu0 %v901_v54 }
 0x701   :  { %905 = vadd.xlane.f32.xlu0 %v904_v56 }
 0x786   :  { %v897_v61 = vpop.xlane.xlu0 %896 }
 0x787   :  { %v907_v57 = vmul.f32 0.015625, %v897_v61  ;;  %v3171_v61 = vld [vmem:[%s4103_s3] sm:$0xff]  }
 0x788   :  { %v900_v58 = vpop.xlane.xlu1 %899  ;;  %2856 = vmatprep.subr.bf16.mxu0 %v3171_v61 }
 0x789   :  { %v911_v59 = vsub.f32 %v891_v21, %v907_v57  ;;  %v908_v60 = vmul.f32 0.015625, %v900_v58  ;;  %2857 = vmatpush3.bf16.msra.mxu0 %v3171_v61  ;;  %v3172_v57 = vld [vmem:[%s4103_s3 + $0x8] sm:$0xff]   ;;  %v3173_v58 = vld [vmem:[%s4103_s3 + $0x10] sm:$0xff]  }
 0x78a   :  { %v903_v62 = vpop.xlane.xlu0 %902  ;;  %2858 = vmatprep.subr.bf16.mxu0 %v3172_v57 }
 0x78b   :  { %v912_v63 = vsub.f32 %v892_v51, %v908_v60  ;;  %v909_v3 = vmul.f32 0.015625, %v903_v62  ;;  %v915_v0 = vmul.f32 %v911_v59, %v911_v59  ;;  %v3175_v60 = vld [vmem:[%s4103_s3 + $0x20] sm:$0xff]   ;;  %v3176_v62 = vld [vmem:[%s4103_s3 + $0x28] sm:$0xff]  }
 0x78d   :  { %v913_v1 = vsub.f32 %v893_v52, %v909_v3  ;;  %v919_v4 = vsel %vm36_vm0, %v915_v0, 0.0  ;;  %v916_v5 = vmul.f32 %v912_v63, %v912_v63  ;;  %2859 = vmatpush3.bf16.msra.mxu0 %v3172_v57  ;;  %v3178_v3 = vld [vmem:[%s4103_s3 + $0x38] sm:$0xff]   ;;  %v967_v0 = vsub.s32 1, %v3493_v6 }
 0x78e   :  { %920 = vadd.xlane.f32.xlu0 %v919_v4  ;;  %v906_v10 = vpop.xlane.xlu0 %905  ;;  %2860 = vmatprep.subr.bf16.mxu0 %v3173_v58 }
 0x78f   :  { %v910_v2 = vmul.f32 0.015625, %v906_v10  ;;  %v922_v12 = vsel %vm36_vm0, %v916_v5, 0.0  ;;  %v917_v13 = vmul.f32 %v913_v1, %v913_v1 }
 0x790   :  { %923 = vadd.xlane.f32.xlu1 %v922_v12 }
 0x791   :  { %v914_v14 = vsub.f32 %v894_v55, %v910_v2  ;;  %v925_v9 = vsel %vm36_vm0, %v917_v13, 0.0  ;;  %2861 = vmatpush3.bf16.msra.mxu0 %v3173_v58 }
 0x792   :  { %926 = vadd.xlane.f32.xlu0 %v925_v9 }
 0x793   :  { %v918_v15 = vmul.f32 %v914_v14, %v914_v14 }
 0x795   :  { %v928_v11 = vsel %vm36_vm0, %v918_v15, 0.0 }
 0x796   :  { %929 = vadd.xlane.f32.xlu1 %v928_v11 }
 0x81b   :  { %v921_v23 = vpop.xlane.xlu0 %920 }
 0x81c   :  { %v931_v24 = vmul.f32 0.015625, %v921_v23 }
 0x81d   :  { %v924_v25 = vpop.xlane.xlu1 %923 }
 0x81e   :  { %v935_v26 = vadd.f32 1e-12, %v931_v24  ;;  %v932_v27 = vmul.f32 0.015625, %v924_v25 }
 0x81f   :  { %v927_v29 = vpop.xlane.xlu0 %926 }
 0x820   :  { %3247 = vrsqrt.f32 %v935_v26  ;;  %v936_v35 = vadd.f32 1e-12, %v932_v27  ;;  %v933_v38 = vmul.f32 0.015625, %v927_v29 }
 0x822   :  { %3249 = vrsqrt.f32 %v936_v35  ;;  %v937_v39 = vadd.f32 1e-12, %v933_v38 }
 0x823   :  { %v930_v40 = vpop.xlane.xlu1 %929 }
 0x824   :  { %3251 = vrsqrt.f32 %v937_v39  ;;  %v934_v41 = vmul.f32 0.015625, %v930_v40 }
 0x826   :  { %v938_v44 = vadd.f32 1e-12, %v934_v41 }
 0x828   :  { %3253 = vrsqrt.f32 %v938_v44 }
 0x82a   :  { %v3248_v31 = vpop.eup %3247 }
 0x82b   :  { %v943_v33 = vmul.f32 %v3248_v31, %v911_v59  ;;  %v3174_v59 = vld [vmem:[%s4103_s3 + $0x18] sm:$0xff]  }
 0x82c   :  { %v3250_v37 = vpop.eup %3249  ;;  %2862 = vmatprep.subr.bf16.mxu0 %v3174_v59 }
 0x82d   :  { %v944_v47 = vmul.f32 %v3250_v37, %v912_v63  ;;  %v951_v18 = vmul.f32 %v950_v45, %v943_v33  ;;  %2863 = vmatpush3.bf16.msra.mxu0 %v3174_v59  ;;  %v3177_v63 = vld [vmem:[%s4103_s3 + $0x30] sm:$0xff]  }
 0x82e   :  { %v3252_v30 = vpop.eup %3251  ;;  %2864 = vmatprep.subr.bf16.mxu0 %v3175_v60 }
 0x82f   :  { %v945_v32 = vmul.f32 %v3252_v30, %v913_v1  ;;  %v952_v34 = vmul.f32 %v950_v45, %v944_v47  ;;  %v3667_v19 = vadd.f32 %v958_v48, %v951_v18  ;;  %v968_v1 = vrot.slane %v3501_v8, %v967_v0 }
 0x831   :  { %v3669_v21 = vadd.f32 %v958_v48, %v952_v34  ;;  %v953_v50 = vmul.f32 %v950_v45, %v945_v32  ;;  %2865 = vmatpush3.bf16.msra.mxu0 %v3175_v60  ;;  %v1088_v60 = vsub.s32 5, %v3493_v6 }
 0x832   :  { %v3254_v49 = vpop.eup %3253  ;;  %2866 = vmatprep.subr.bf16.mxu0 %v3176_v62 }
 0x833   :  { %v946_v51 = vmul.f32 %v3254_v49, %v914_v14  ;;  %v963_v52 = vpack.c.bf16 %v3669_v21, %v3667_v19  ;;  %v3674_v54 = vadd.f32 %v958_v48, %v953_v50 }
 0x835   :  { %v954_v53 = vmul.f32 %v950_v45, %v946_v51  ;;  %2852 = vmatprep.mubr.msk.bf16.mxu1 %vm36_vm0, %v963_v52  ;;  %2867 = vmatpush3.bf16.msra.mxu0 %v3176_v62  ;;  %v1089_v62 = vrot.slane %v3501_v8, %v1088_v60 }
 0x836   :  { %2868 = vmatprep.subr.bf16.mxu0 %v3177_v63 }
 0x837   :  { %v3676_v55 = vadd.f32 %v958_v48, %v954_v53 }
 0x839   :  { %v964_v56 = vpack.c.bf16 %v3676_v55, %v3674_v54  ;;  %2869 = vmatpush3.bf16.msra.mxu0 %v3177_v63 }
 0x83a   :  { %2870 = vmatprep.subr.bf16.mxu0 %v3178_v3 }
 0x83b   :  { %2853 = vmatmul.mubr.msk.bf16.vlgmr.msra.gmra.mrb[12].mxu1 %vm36_vm0, %v964_v56 }
 0x83c   :  { %1384 = vmatprep.mubr.bf16.mxu1 %v3358_v36 }
 0x83d   :  { %2871 = vmatpush3.bf16.msra.mxu0 %v3178_v3 }
 0x90e   :  { %v2854_v4 = vpop.f32.mrb[12].mxu1 }
 0x90f   :  { %v1042_v5 = vadd.f32 %v2854_v4, %v968_v1  ;;  %v1033_v10 = vpop.f32.mrb[13].mxu1 }
 0x910   :  { %v1034_v2 = vadd.f32 %v1033_v10, %v968_v1  ;;  %v2855_v12 = vpop.f32.mrb[14].mxu1 }
 0x911   :  { %v1054_v13 = vmul.f32 0.044715, %v1042_v5  ;;  %v1045_v14 = vadd.f32 %v2855_v12, %v968_v1  ;;  %v1036_v9 = vpop.f32.mrb[15].mxu1  ;;  %v1050_v32 = vmul.f32 0.5, %v1042_v5 }
 0x912   :  { %v1052_v15 = vmul.f32 0.044715, %v1034_v2  ;;  %v1037_v11 = vadd.f32 %v1036_v9, %v968_v1  ;;  %v1048_v50 = vmul.f32 0.5, %v1034_v2 }
 0x913   :  { %v1058_v16 = vmul.f32 %v1054_v13, %v1042_v5  ;;  %v1055_v17 = vmul.f32 0.044715, %v1045_v14  ;;  %v1051_v34 = vmul.f32 0.5, %v1045_v14 }
 0x914   :  { %v1056_v20 = vmul.f32 %v1052_v15, %v1034_v2  ;;  %v1053_v22 = vmul.f32 0.044715, %v1037_v11  ;;  %v1049_v51 = vmul.f32 0.5, %v1037_v11 }
 0x915   :  { %v1062_v23 = vmul.f32 %v1058_v16, %v1042_v5  ;;  %v1059_v24 = vmul.f32 %v1055_v17, %v1045_v14 }
 0x916   :  { %v1060_v25 = vmul.f32 %v1056_v20, %v1034_v2  ;;  %v1057_v26 = vmul.f32 %v1053_v22, %v1037_v11 }
 0x917   :  { %v1066_v27 = vadd.f32 %v1062_v23, %v1042_v5  ;;  %v1063_v29 = vmul.f32 %v1059_v24, %v1045_v14 }
 0x918   :  { %v1061_v35 = vmul.f32 %v1057_v26, %v1037_v11  ;;  %v1064_v38 = vadd.f32 %v1060_v25, %v1034_v2 }
 0x919   :  { %v1070_v39 = vmul.f32 0.7978846, %v1066_v27  ;;  %v1067_v40 = vadd.f32 %v1063_v29, %v1045_v14 }
 0x91a   :  { %v1065_v41 = vadd.f32 %v1061_v35, %v1037_v11  ;;  %v1068_v44 = vmul.f32 0.7978846, %v1064_v38 }
 0x91b   :  { %3255 = vtanh.f32 %v1070_v39  ;;  %v1071_v45 = vmul.f32 0.7978846, %v1067_v40 }
 0x91c   :  { %v1069_v31 = vmul.f32 0.7978846, %v1065_v41  ;;  %3257 = vtanh.f32 %v1068_v44 }
 0x91d   :  { %3259 = vtanh.f32 %v1071_v45 }
 0x91e   :  { %3261 = vtanh.f32 %v1069_v31 }
 0x925   :  { %v3256_v33 = vpop.eup %3255 }
 0x926   :  { %v3258_v37 = vpop.eup %3257  ;;  %v1078_v47 = vadd.f32 1.0, %v3256_v33  ;;  %v3729_v33 = vld [vmem:[%s4102_s2 + $0x64] ss:$12 sps:$4 sm:$0xff]  }
 0x927   :  { %v3260_v48 = vpop.eup %3259  ;;  %v1076_v18 = vadd.f32 1.0, %v3258_v37  ;;  %v3179_v37 = vld [vmem:[%s4102_s2 + $0x60] ss:$12 sps:$4 sm:$0xff]   ;;  %1352 = vmatprep.subr.bf16.mxu1 %v3729_v33 }
 0x928   :  { %v3262_v30 = vpop.eup %3261  ;;  %v1079_v49 = vadd.f32 1.0, %v3260_v48  ;;  %v1082_v53 = vmul.f32 %v1078_v47, %v1050_v32  ;;  %1353 = vmatpush1.bf16.msra.mxu1 %v3179_v37  ;;  %v3738_v47 = vld [vmem:[%s4102_s2 + $0x7c] ss:$12 sps:$4 sm:$0xff]   ;;  %v3182_v48 = vld [vmem:[%s4102_s2 + $0x78] ss:$12 sps:$4 sm:$0xff]  }
 0x929   :  { %v1077_v52 = vadd.f32 1.0, %v3262_v30  ;;  %v1080_v61 = vmul.f32 %v1076_v18, %v1048_v50  ;;  %1354 = vmatprep.subr.bf16.mxu1 %v3738_v47  ;;  %v3747_v18 = vld [vmem:[%s4102_s2 + $0x94] ss:$12 sps:$4 sm:$0xff]   ;;  %v3185_v30 = vld [vmem:[%s4102_s2 + $0x90] ss:$12 sps:$4 sm:$0xff]  }
 0x92a   :  { %v1083_v56 = vmul.f32 %v1079_v49, %v1051_v34  ;;  %v3756_v32 = vld [vmem:[%s4102_s2 + $0xac] ss:$12 sps:$4 sm:$0xff]   ;;  %v3188_v34 = vld [vmem:[%s4102_s2 + $0xa8] ss:$12 sps:$4 sm:$0xff]  }
 0x92b   :  { %v1081_v57 = vmul.f32 %v1077_v52, %v1049_v51 }
 0x92c   :  { %v1085_v58 = vpack.c.bf16 %v1083_v56, %v1082_v53  ;;  %1355 = vmatpush1.bf16.msra.mxu1 %v3182_v48 }
 0x92d   :  { %v1084_v59 = vpack.c.bf16 %v1081_v57, %v1080_v61  ;;  %1356 = vmatprep.subr.bf16.mxu1 %v3747_v18 }
 0x92f   :  { %2872 = vmatprep.mubr.bf16.mxu0 %v1084_v59 }
 0x930   :  { %2873 = vmatmul.mubr.bf16.vlgmr.msra.gmra.mrb[16].mxu0 %v1085_v58  ;;  %1357 = vmatpush1.bf16.msra.mxu1 %v3185_v30 }
 0x931   :  { %1358 = vmatprep.subr.bf16.mxu1 %v3756_v32 }
 0x934   :  { %1359 = vmatpush1.bf16.msra.mxu1 %v3188_v34 }
 0xa03   :  { %v2874_v63 = vpop.f32.mrb[16].mxu0 }
 0xa04   :  { %v1172_v3 = vpop.f32.mrb[17].mxu0  ;;  %v1181_v1 = vadd.f32 %v2874_v63, %v1089_v62 }
 0xa05   :  { %v1173_v4 = vadd.f32 %v1172_v3, %v1089_v62  ;;  %v2875_v5 = vpop.f32.mrb[18].mxu0  ;;  %v1245_v3 = vsub.s32 6, %v3493_v6 }
 0xa06   :  { %v1175_v10 = vpop.f32.mrb[19].mxu0  ;;  %v1184_v2 = vadd.f32 %v2875_v5, %v1089_v62  ;;  %v1189_v15 = vadd.f32 %v1181_v1, %v3674_v54  ;;  %v3329_v1 = vld [vmem:[%s4104_s4] sm:$0xff]  ;;  %v1253_v5 = vsub.s32 7, %v3493_v6 }
 0xa07   :  { %v1176_v12 = vadd.f32 %v1175_v10, %v1089_v62  ;;  %v1187_v13 = vadd.f32 %v1173_v4, %v3667_v19  ;;  %v1246_v4 = vrot.slane %v3329_v1, %v1245_v3 }
 0xa08   :  { %v1190_v8 = vadd.f32 %v1184_v2, %v3676_v55  ;;  %v1197_v16 = vsel %vm36_vm0, %v1189_v15, 0.0 }
 0xa09   :  { %v1191_v14 = vsel %vm36_vm0, %v1187_v13, 0.0  ;;  %v1188_v9 = vadd.f32 %v1176_v12, %v3669_v21 }
 0xa0a   :  { %1192 = vadd.xlane.f32.xlu0 %v1191_v14  ;;  %v1200_v17 = vsel %vm36_vm0, %v1190_v8, 0.0 }
 0xa0b   :  { %v1194_v11 = vsel %vm36_vm0, %v1188_v9, 0.0 }
 0xa0c   :  { %1195 = vadd.xlane.f32.xlu1 %v1194_v11 }
 0xa0e   :  { %1198 = vadd.xlane.f32.xlu0 %v1197_v16 }
 0xa10   :  { %1201 = vadd.xlane.f32.xlu1 %v1200_v17 }
 0xa97   :  { %v1193_v20 = vpop.xlane.xlu0 %1192 }
 0xa98   :  { %v1203_v19 = vmul.f32 0.015625, %v1193_v20 }
 0xa99   :  { %v1196_v22 = vpop.xlane.xlu1 %1195 }
 0xa9a   :  { %v1207_v23 = vsub.f32 %v1187_v13, %v1203_v19  ;;  %v1204_v24 = vmul.f32 0.015625, %v1196_v22 }
 0xa9b   :  { %v1199_v21 = vpop.xlane.xlu0 %1198 }
 0xa9c   :  { %v1208_v25 = vsub.f32 %v1188_v9, %v1204_v24  ;;  %v1205_v54 = vmul.f32 0.015625, %v1199_v21  ;;  %v1211_v26 = vmul.f32 %v1207_v23, %v1207_v23  ;;  %v1254_v9 = vrot.slane %v3329_v1, %v1253_v5 }
 0xa9d   :  { %v1202_v27 = vpop.xlane.xlu1 %1201 }
 0xa9e   :  { %v1209_v29 = vsub.f32 %v1189_v15, %v1205_v54  ;;  %v1206_v35 = vmul.f32 0.015625, %v1202_v27  ;;  %v1215_v55 = vsel %vm36_vm0, %v1211_v26, 0.0  ;;  %v1212_v38 = vmul.f32 %v1208_v25, %v1208_v25  ;;  %v3789_v26 = vld [vmem:[%s4104_s4 + $0x10] sm:$0xff] }
 0xa9f   :  { %1216 = vadd.xlane.f32.xlu0 %v1215_v55  ;;  %v1301_v27 = vrot.slane %v3789_v26, %v3496_v7 }
 0xaa0   :  { %v1210_v39 = vsub.f32 %v1190_v8, %v1206_v35  ;;  %v1218_v40 = vsel %vm36_vm0, %v1212_v38, 0.0  ;;  %v1213_v41 = vmul.f32 %v1209_v29, %v1209_v29 }
 0xaa1   :  { %1219 = vadd.xlane.f32.xlu1 %v1218_v40 }
 0xaa2   :  { %v1221_v44 = vsel %vm36_vm0, %v1213_v41, 0.0  ;;  %v1214_v45 = vmul.f32 %v1210_v39, %v1210_v39 }
 0xaa3   :  { %1222 = vadd.xlane.f32.xlu0 %v1221_v44 }
 0xaa4   :  { %v1224_v31 = vsel %vm36_vm0, %v1214_v45, 0.0 }
 0xaa5   :  { %1225 = vadd.xlane.f32.xlu1 %v1224_v31 }
 0xb2c   :  { %v1217_v49 = vpop.xlane.xlu0 %1216 }
 0xb2d   :  { %v1227_v50 = vmul.f32 0.015625, %v1217_v49 }
 0xb2e   :  { %v1220_v51 = vpop.xlane.xlu1 %1219 }
 0xb2f   :  { %v1231_v52 = vadd.f32 1e-12, %v1227_v50  ;;  %v1228_v53 = vmul.f32 0.015625, %v1220_v51 }
 0xb30   :  { %v1223_v56 = vpop.xlane.xlu0 %1222 }
 0xb31   :  { %3263 = vrsqrt.f32 %v1231_v52  ;;  %v1232_v61 = vadd.f32 1e-12, %v1228_v53  ;;  %v1229_v57 = vmul.f32 0.015625, %v1223_v56 }
 0xb32   :  { %v1226_v58 = vpop.xlane.xlu1 %1225 }
 0xb33   :  { %3265 = vrsqrt.f32 %v1232_v61  ;;  %v1233_v59 = vadd.f32 1e-12, %v1229_v57  ;;  %v1230_v62 = vmul.f32 0.015625, %v1226_v58 }
 0xb35   :  { %3267 = vrsqrt.f32 %v1233_v59  ;;  %v1234_v63 = vadd.f32 1e-12, %v1230_v62 }
 0xb37   :  { %3269 = vrsqrt.f32 %v1234_v63 }
 0xb3b   :  { %v3264_v10 = vpop.eup %3263 }
 0xb3c   :  { %v1239_v2 = vmul.f32 %v3264_v10, %v1207_v23 }
 0xb3d   :  { %v3266_v12 = vpop.eup %3265 }
 0xb3e   :  { %v1247_v13 = vmul.f32 %v1246_v4, %v1239_v2  ;;  %v1240_v14 = vmul.f32 %v3266_v12, %v1208_v25 }
 0xb3f   :  { %v3268_v15 = vpop.eup %3267 }
 0xb40   :  { %v1248_v11 = vmul.f32 %v1246_v4, %v1240_v14  ;;  %v1241_v16 = vmul.f32 %v3268_v15, %v1209_v29  ;;  %v3771_v20 = vadd.f32 %v1254_v9, %v1247_v13  ;;  %v3852_v15 = vld [vmem:[%s4101_s1 + $0x8] sm:$0xff] }
 0xb41   :  { %v3270_v8 = vpop.eup %3269 }
 0xb42   :  { %v1242_v17 = vmul.f32 %v3270_v8, %v1210_v39  ;;  %v3773_v19 = vadd.f32 %v1254_v9, %v1248_v11  ;;  %v1249_v23 = vmul.f32 %v1246_v4, %v1241_v16  ;;  %v3858_v16 = vld [vmem:[%s4101_s1] sm:$0xff] }
 0xb44   :  { %v1296_v22 = vpack.c.bf16 %v3773_v19, %v3771_v20  ;;  %v1250_v24 = vmul.f32 %v1246_v4, %v1242_v17  ;;  %v3781_v25 = vadd.f32 %v1254_v9, %v1249_v23 }
 0xb46   :  { %2615 = vmatmul.mubr.msk.bf16.vlgmr.msra.gmra.mrb[16].mxu1 %vm36_vm0, %v1296_v22  ;;  %v3779_v21 = vadd.f32 %v1254_v9, %v1250_v24 }
 0xb47   :  { %1394 = vmatprep.mubr.bf16.mxu1 %v3358_v36  ;;  %v2606_v36 = vld [vmem:[%s4104_s4 + $0x18] sm:$0xff] }
 0xb48   :  { %v1297_v54 = vpack.c.bf16 %v3779_v21, %v3781_v25  ;;  %v1305_v35 = vrot.slane %v2606_v36, %v3496_v7  ;;  %v3866_v36 = vld [vmem:[%s4101_s1 + $0x18] sm:$0xff] }
 0xb4e   :  { %2616 = vmatmul.mubr.msk.bf16.gmra.mrb[20].mxu1 %vm36_vm0, %v1297_v54 }
 0xc19   :  { %v1386_v29 = vpop.f32.mrb[16].mxu1 }
 0xc1a   :  { %v3797_v55 = vadd.f32 %v1386_v29, %v1301_v27  ;;  %v1388_v38 = vpop.f32.mrb[17].mxu1 }
 0xc1b   :  { %v1390_v39 = vpop.f32.mrb[18].mxu1  ;;  %v3803_v44 = vadd.f32 %v1388_v38, %v1305_v35 }
 0xc1c   :  { %v3799_v40 = vadd.f32 %v1390_v39, %v1301_v27  ;;  %v1392_v41 = vpop.f32.mrb[19].mxu1  ;;  %2884 = vmatprep.mubr.msk.f32.mxu1 %vm265_vm1, %v3797_v55 }
 0xc1d   :  { %v3805_v45 = vadd.f32 %v1392_v41, %v1305_v35 }
 0xc1e   :  { %v3809_v31 = vpack.i.bf16 %v3799_v40, %v3797_v55 }
 0xc1f   :  { %v3135_v7 = vpack.i.bf16 %v3805_v45, %v3803_v44  ;;  %v3040_v37 = vpack.c.bf16 %v3805_v45, %v3803_v44 }
 0xc20   :  { %3116 = vrot.lane.b32.xlu0 %v3809_v31, %s3359_s13 }
 0xc21   :  { %v1396_v48 = vpop.f32.mrb[20].mxu1 }
 0xc22   :  { %v1398_v30 = vpop.f32.mrb[21].mxu1  ;;  %v3817_v49 = vadd.f32 %v1396_v48, %v1301_v27 }
 0xc23   :  { %v1400_v34 = vpop.f32.mrb[22].mxu1  ;;  %v3821_v52 = vadd.f32 %v1398_v30, %v1305_v35 }
 0xc24   :  { %v3819_v50 = vadd.f32 %v1400_v34, %v1301_v27  ;;  %v1402_v51 = vpop.f32.mrb[23].mxu1 }
 0xc25   :  { %v3823_v53 = vadd.f32 %v1402_v51, %v1305_v35  ;;  %v3872_v35 = vld [vmem:[%s4101_s1 + $0x10] sm:$0xff] }
 0xc26   :  { %v3827_v56 = vpack.i.bf16 %v3819_v50, %v3817_v49 }
 0xc27   :  { %v3140_v61 = vpack.i.bf16 %v3823_v53, %v3821_v52  ;;  %v3044_v57 = vpack.c.bf16 %v3823_v53, %v3821_v52 }
 0xc28   :  { %3121 = vrot.lane.b32.xlu1 %v3827_v56, %s3359_s13 }
 0xc92   :  { %v3117_v58 = vpop.permute.xlu0 %3116 }
 0xc93   :  { %v3119_v59 = vunpack.i.h.bf16 %v3117_v58  ;;  %v3118_v62 = vunpack.i.l.bf16 %v3117_v58 }
 0xc95   :  { %v3028_v63 = vpack.c.bf16 %v3119_v59, %v3118_v62 }
 0xc97   :  { %3030 = vmatprep.subr.msk.bf16.mxu1 %vm3536_vm2, %v3028_v63 }
 0xc98   :  { %3033 = vmatpush3.bf16.xpose.msk.msra.mxu1 %vm3536_vm2, %v3028_v63 }
 0xc9a   :  { %v3122_v1 = vpop.permute.xlu1 %3121 }
 0xc9b   :  { %v3124_v4 = vunpack.i.h.bf16 %v3122_v1  ;;  %v3123_v10 = vunpack.i.l.bf16 %v3122_v1 }
 0xc9d   :  { %v3034_v2 = vpack.c.bf16 %v3124_v4, %v3123_v10 }
 0xc9f   :  { %3036 = vmatprep.subr.msk.bf16.mxu1 %vm3536_vm2, %v3034_v2 }
 0xca0   :  { %3039 = vmatpush3.bf16.xpose.msk.msra.mxu1 %vm3536_vm2, %v3034_v2 }
 0xca1   :  { %3041 = vmatprep.subr.bf16.mxu1 %v3040_v37 }
 0xca7   :  { %2885 = vmatmul.mubr.msk.f32.vlgmr.msra.gmra.mrb[24].mxu1 %vm265_vm1, %v3799_v40 }
 0xca8   :  { %2887 = vmatprep.mubr.msk.f32.mxu1 %vm265_vm1, %v3817_v49  ;;  %3043 = vmatpush3.bf16.msra.mxu1 %v3040_v37 }
 0xca9   :  { %3045 = vmatprep.subr.bf16.mxu1 %v3044_v57 }
 0xcab   :  { %2888 = vmatmul.mubr.msk.f32.gmra.mrb[26].mxu1 %vm265_vm1, %v3819_v50 }
 0xcac   :  { %3047 = vmatpush3.bf16.msra.mxu1 %v3044_v57 }
 0xd7a   :  { %v2886_v12 = vpop.f32.mrb[24].mxu1 }
 0xd7b   :  { %v1519_v13 = vmul.f32 0.17677669, %v2886_v12  ;;  %v1499_v14 = vpop.f32.mrb[25].mxu1 }
 0xd7c   :  { %v1518_v9 = vmul.f32 0.17677669, %v1499_v14 }
 0xd7d   :  { %v1523_v11 = vadd.f32 %v3852_v15, %v1519_v13 }
 0xd7e   :  { %v2889_v8 = vpop.f32.mrb[26].mxu1  ;;  %v1522_v17 = vadd.f32 %v3858_v16, %v1518_v9 }
 0xd7f   :  { %v1521_v22 = vmul.f32 0.17677669, %v2889_v8  ;;  %v1509_v24 = vpop.f32.mrb[27].mxu1  ;;  %v1529_v23 = vsel %vm265_vm1, %v1523_v11, -inf }
 0xd80   :  { %v1520_v54 = vmul.f32 0.17677669, %v1509_v24  ;;  %1530 = vmax.xlane.f32.xlu0 %v1529_v23  ;;  %v1526_v27 = vsel %vm265_vm1, %v1522_v17, -inf }
 0xd81   :  { %1527 = vmax.xlane.f32.xlu1 %v1526_v27  ;;  %v1525_v29 = vadd.f32 %v3866_v36, %v1521_v22 }
 0xd82   :  { %v1524_v38 = vadd.f32 %v3872_v35, %v1520_v54 }
 0xd83   :  { %v1535_v39 = vsel %vm265_vm1, %v1525_v29, -inf }
 0xd84   :  { %v1532_v41 = vsel %vm265_vm1, %v1524_v38, -inf }
 0xd85   :  { %1536 = vmax.xlane.f32.xlu1 %v1535_v39  ;;  %1533 = vmax.xlane.f32.xlu0 %v1532_v41 }
 0xe0d   :  { %v1531_v37 = vpop.xlane.xlu0 %1530 }
 0xe0e   :  { %v1539_v48 = vsub.f32 %v1523_v11, %v1531_v37  ;;  %v1528_v30 = vpop.xlane.xlu1 %1527 }
 0xe0f   :  { %v1538_v34 = vsub.f32 %v1522_v17, %v1528_v30 }
 0xe10   :  { %v1544_v51 = vmul.f32 1.442695, %v1539_v48 }
 0xe11   :  { %v1542_v57 = vmul.f32 1.442695, %v1538_v34 }
 0xe12   :  { %3271 = vpow2.f32 %v1544_v51  ;;  %v1537_v58 = vpop.xlane.xlu1 %1536  ;;  %v1534_v59 = vpop.xlane.xlu0 %1533 }
 0xe13   :  { %3273 = vpow2.f32 %v1542_v57  ;;  %v1541_v62 = vsub.f32 %v1525_v29, %v1537_v58  ;;  %v1540_v63 = vsub.f32 %v1524_v38, %v1534_v59 }
 0xe15   :  { %v1548_v1 = vmul.f32 1.442695, %v1541_v62  ;;  %v1546_v4 = vmul.f32 1.442695, %v1540_v63 }
 0xe17   :  { %3275 = vpow2.f32 %v1548_v1 }
 0xe18   :  { %3277 = vpow2.f32 %v1546_v4 }
 0xe1c   :  { %v3272_v10 = vpop.eup %3271 }
 0xe1d   :  { %v3274_v2 = vpop.eup %3273  ;;  %v1553_v12 = vsel %vm265_vm1, %v3272_v10, 0.0 }
 0xe1e   :  { %1554 = vadd.xlane.f32.xlu1 %v1553_v12  ;;  %v1550_v13 = vsel %vm265_vm1, %v3274_v2, 0.0 }
 0xe1f   :  { %1551 = vadd.xlane.f32.xlu0 %v1550_v13 }
 0xe21   :  { %v3276_v14 = vpop.eup %3275 }
 0xe22   :  { %v3278_v9 = vpop.eup %3277  ;;  %v1559_v11 = vsel %vm265_vm1, %v3276_v14, 0.0 }
 0xe23   :  { %1560 = vadd.xlane.f32.xlu1 %v1559_v11  ;;  %v1556_v8 = vsel %vm265_vm1, %v3278_v9, 0.0 }
 0xe24   :  { %1557 = vadd.xlane.f32.xlu0 %v1556_v8 }
 0xe34   :  { %3131 = vrot.lane.b32.xlu1 %v3827_v56, %s3361_s15 }
 0xe38   :  { %1667 = vrot.lane.b32.xlu1 %v3797_v55, %s3360_s14 }
 0xe3a   :  { %3126 = vrot.lane.b32.xlu0 %v3809_v31, %s3361_s15 }
 0xe3c   :  { %1669 = vrot.lane.b32.xlu1 %v3799_v40, %s3360_s14 }
 0xe3e   :  { %1671 = vrot.lane.b32.xlu0 %v3817_v49, %s3360_s14 }
 0xe40   :  { %1673 = vrot.lane.b32.xlu1 %v3819_v50, %s3360_s14 }
 0xeab   :  { %v1555_v17 = vpop.xlane.xlu1 %1554 }
 0xeac   :  { %3279 = vrcp.f32 %v1555_v17  ;;  %v1552_v22 = vpop.xlane.xlu0 %1551 }
 0xead   :  { %3281 = vrcp.f32 %v1552_v22 }
 0xeb0   :  { %v1561_v56 = vpop.xlane.xlu1 %1560 }
 0xeb1   :  { %3283 = vrcp.f32 %v1561_v56  ;;  %v1558_v24 = vpop.xlane.xlu0 %1557 }
 0xeb2   :  { %3285 = vrcp.f32 %v1558_v24 }
 0xeb4   :  { %v3132_v55 = vpop.permute.xlu1 %3131 }
 0xeb5   :  { %v3127_v23 = vpop.permute.xlu0 %3126  ;;  %v3134_v29 = vunpack.i.h.bf16 %v3132_v55  ;;  %v3133_v38 = vunpack.i.l.bf16 %v3132_v55 }
 0xeb6   :  { %v3280_v31 = vpop.eup %3279  ;;  %v3129_v54 = vunpack.i.h.bf16 %v3127_v23  ;;  %v3128_v27 = vunpack.i.l.bf16 %v3127_v23 }
 0xeb7   :  { %v3282_v40 = vpop.eup %3281  ;;  %v1565_v41 = vmul.f32 %v3280_v31, %v3272_v10  ;;  %v3054_v37 = vpack.c.bf16 %v3134_v29, %v3133_v38 }
 0xeb8   :  { %v3048_v49 = vpack.c.bf16 %v3129_v54, %v3128_v27  ;;  %v1563_v39 = vmul.f32 %v3282_v40, %v3274_v2  ;;  %v1668_v51 = vpop.permute.xlu1 %1667 }
 0xeb9   :  { %v1672_v58 = vpop.permute.xlu0 %1671 }
 0xeba   :  { %3050 = vmatprep.subr.msk.bf16.mxu1 %vm3536_vm2, %v3048_v49  ;;  %2898 = vmatprep.mubr.msk.f32.mxu1 %vm265_vm1, %v1563_v39 }
 0xebb   :  { %v3284_v50 = vpop.eup %3283  ;;  %2899 = vmatmul.mubr.msk.f32.vlgmr.msra.gmra.mrb[28].mxu1 %vm265_vm1, %v1565_v41 }
 0xebc   :  { %v3286_v48 = vpop.eup %3285  ;;  %3053 = vmatpush3.bf16.xpose.msk.msra.mxu1 %vm3536_vm2, %v3048_v49  ;;  %v1569_v30 = vmul.f32 %v3284_v50, %v3276_v14  ;;  %v1670_v57 = vpop.permute.xlu1 %1669 }
 0xebd   :  { %3056 = vmatprep.subr.msk.bf16.mxu1 %vm3536_vm2, %v3054_v37  ;;  %v1567_v34 = vmul.f32 %v3286_v48, %v3278_v9 }
 0xebf   :  { %2901 = vmatprep.mubr.msk.f32.mxu1 %vm265_vm1, %v1567_v34 }
 0xec0   :  { %2902 = vmatmul.mubr.msk.f32.gmra.mrb[30].mxu1 %vm265_vm1, %v1569_v30  ;;  %v1674_v59 = vpop.permute.xlu1 %1673 }
 0xec1   :  { %2912 = vmatprep.mubr.msk.f32.mxu1 %vm265_vm1, %v1668_v51 }
 0xec4   :  { %3059 = vmatpush3.bf16.xpose.msk.msra.mxu1 %vm3536_vm2, %v3054_v37 }
 0xecb   :  { %2913 = vmatmul.mubr.msk.f32.vlgmr.msra.gmra.mrb[32].mxu1 %vm265_vm1, %v1670_v57 }
 0xecc   :  { %2915 = vmatprep.mubr.msk.f32.mxu1 %vm265_vm1, %v1672_v58 }
 0xecf   :  { %2916 = vmatmul.mubr.msk.f32.gmra.mrb[34].mxu1 %vm265_vm1, %v1674_v59 }
 0xf8e   :  { %v3909_v62 = vpop.f32.mrb[28].mxu1 }
 0xf8f   :  { %v3911_v63 = vpop.f32.mrb[29].mxu1 }
 0xf93   :  { %v3913_v1 = vpop.f32.mrb[30].mxu1 }
 0xf94   :  { %v3915_v4 = vpop.f32.mrb[31].mxu1 }
 0xf9e   :  { %v2914_v10 = vpop.f32.mrb[32].mxu1 }
 0xf9f   :  { %v1785_v42 = vmul.f32 0.17677669, %v2914_v10  ;;  %v1765_v2 = vpop.f32.mrb[33].mxu1 }
 0xfa0   :  { %v1784_v12 = vmul.f32 0.17677669, %v1765_v2 }
 0xfa1   :  { %v1789_v13 = vadd.f32 %v3852_v15, %v1785_v42 }
 0xfa2   :  { %v2917_v14 = vpop.f32.mrb[34].mxu1  ;;  %v1788_v9 = vadd.f32 %v3858_v16, %v1784_v12 }
 0xfa3   :  { %v1775_v11 = vpop.f32.mrb[35].mxu1  ;;  %v1795_v8 = vsel %vm265_vm1, %v1789_v13, -inf  ;;  %v1787_v17 = vmul.f32 0.17677669, %v2917_v14 }
 0xfa4   :  { %v1786_v22 = vmul.f32 0.17677669, %v1775_v11  ;;  %1796 = vmax.xlane.f32.xlu1 %v1795_v8  ;;  %v1792_v56 = vsel %vm265_vm1, %v1788_v9, -inf }
 0xfa5   :  { %1793 = vmax.xlane.f32.xlu0 %v1792_v56  ;;  %v1791_v23 = vadd.f32 %v3866_v36, %v1787_v17 }
 0xfa6   :  { %v1790_v24 = vadd.f32 %v3872_v35, %v1786_v22 }
 0xfa7   :  { %v1801_v15 = vsel %vm265_vm1, %v1791_v23, -inf }
 0xfa8   :  { %v1798_v55 = vsel %vm265_vm1, %v1790_v24, -inf }
 0xfa9   :  { %1799 = vmax.xlane.f32.xlu0 %v1798_v55 }
 0xfad   :  { %1802 = vmax.xlane.f32.xlu0 %v1801_v15 }
0x1031   :  { %v1797_v16 = vpop.xlane.xlu1 %1796 }
0x1032   :  { %v1805_v31 = vsub.f32 %v1789_v13, %v1797_v16  ;;  %v1794_v54 = vpop.xlane.xlu0 %1793 }
0x1033   :  { %v1804_v27 = vsub.f32 %v1788_v9, %v1794_v54 }
0x1034   :  { %v1810_v40 = vmul.f32 1.442695, %v1805_v31 }
0x1035   :  { %v1808_v29 = vmul.f32 1.442695, %v1804_v27 }
0x1036   :  { %3287 = vpow2.f32 %v1810_v40  ;;  %v1800_v38 = vpop.xlane.xlu0 %1799 }
0x1037   :  { %3289 = vpow2.f32 %v1808_v29  ;;  %v1806_v49 = vsub.f32 %v1790_v24, %v1800_v38 }
0x1039   :  { %v1812_v39 = vmul.f32 1.442695, %v1806_v49 }
0x103a   :  { %v1803_v35 = vpop.xlane.xlu0 %1802 }
0x103b   :  { %3291 = vpow2.f32 %v1812_v39  ;;  %v1807_v41 = vsub.f32 %v1791_v23, %v1803_v35 }
0x103d   :  { %v1814_v50 = vmul.f32 1.442695, %v1807_v41 }
0x103f   :  { %3293 = vpow2.f32 %v1814_v50 }
0x1040   :  { %v3288_v36 = vpop.eup %3287 }
0x1041   :  { %v3290_v37 = vpop.eup %3289  ;;  %v1819_v48 = vsel %vm265_vm1, %v3288_v36, 0.0 }
0x1042   :  { %1820 = vadd.xlane.f32.xlu1 %v1819_v48  ;;  %v1816_v30 = vsel %vm265_vm1, %v3290_v37, 0.0 }
0x1043   :  { %1817 = vadd.xlane.f32.xlu0 %v1816_v30 }
0x1045   :  { %v3292_v34 = vpop.eup %3291 }
0x1046   :  { %v1822_v51 = vsel %vm265_vm1, %v3292_v34, 0.0 }
0x1047   :  { %1823 = vadd.xlane.f32.xlu0 %v1822_v51 }
0x1049   :  { %v3294_v57 = vpop.eup %3293 }
0x104a   :  { %v1825_v58 = vsel %vm265_vm1, %v3294_v57, 0.0 }
0x104b   :  { %1826 = vadd.xlane.f32.xlu1 %v1825_v58 }
0x105c   :  { %3141 = vrot.lane.b32.xlu1 %v3140_v61, %s3360_s14 }
0x105d   :  { %3136 = vrot.lane.b32.xlu0 %v3135_v7, %s3360_s14 }
0x1060   :  { %1975 = vrot.lane.b32.xlu1 %v3729_v33, %s3359_s13 }
0x1061   :  { %1979 = vrot.lane.b32.xlu0 %v3747_v18, %s3359_s13 }
0x1064   :  { %1977 = vrot.lane.b32.xlu1 %v3738_v47, %s3359_s13 }
0x1065   :  { %1981 = vrot.lane.b32.xlu0 %v3756_v32, %s3359_s13 }
0x10cf   :  { %v1821_v52 = vpop.xlane.xlu1 %1820 }
0x10d0   :  { %v1818_v59 = vpop.xlane.xlu0 %1817 }
0x10d1   :  { %3295 = vrcp.f32 %v1818_v59 }
0x10d2   :  { %3297 = vrcp.f32 %v1821_v52 }
0x10d4   :  { %v1824_v53 = vpop.xlane.xlu0 %1823 }
0x10d5   :  { %3299 = vrcp.f32 %v1824_v53 }
0x10d8   :  { %v1827_v44 = vpop.xlane.xlu1 %1826  ;;  %v3137_v45 = vpop.permute.xlu0 %3136 }
0x10d9   :  { %v3139_v7 = vunpack.i.h.bf16 %v3137_v45  ;;  %v3138_v61 = vunpack.i.l.bf16 %v3137_v45  ;;  %3301 = vrcp.f32 %v1827_v44 }
0x10db   :  { %v3296_v33 = vpop.eup %3295  ;;  %v3060_v10 = vpack.c.bf16 %v3139_v7, %v3138_v61 }
0x10dc   :  { %v3142_v18 = vpop.permute.xlu1 %3141  ;;  %v1829_v42 = vmul.f32 %v3296_v33, %v3290_v37  ;;  %v3298_v12 = vpop.eup %3297 }
0x10dd   :  { %v3144_v2 = vunpack.i.h.bf16 %v3142_v18  ;;  %v3143_v47 = vunpack.i.l.bf16 %v3142_v18  ;;  %3061 = vmatprep.subr.bf16.mxu0 %v3060_v10  ;;  %v1831_v14 = vmul.f32 %v3298_v12, %v3288_v36  ;;  %v1980_v56 = vpop.permute.xlu0 %1979 }
0x10de   :  { %3063 = vmatpush3.bf16.msra.mxu0 %v3060_v10  ;;  %2926 = vmatprep.mubr.msk.f32.mxu0 %vm265_vm1, %v1829_v42 }
0x10df   :  { %v3064_v32 = vpack.c.bf16 %v3144_v2, %v3143_v47  ;;  %v3300_v13 = vpop.eup %3299 }
0x10e0   :  { %v1833_v11 = vmul.f32 %v3300_v13, %v3292_v34  ;;  %v1976_v17 = vpop.permute.xlu1 %1975 }
0x10e1   :  { %3065 = vmatprep.subr.bf16.mxu0 %v3064_v32  ;;  %v1982_v24 = vpop.permute.xlu0 %1981 }
0x10e2   :  { %3067 = vmatpush3.bf16.msra.mxu0 %v3064_v32 }
0x10e3   :  { %v3302_v9 = vpop.eup %3301  ;;  %2932 = vmatprep.subr.bf16.mxu0 %v1976_v17 }
0x10e4   :  { %v1835_v8 = vmul.f32 %v3302_v9, %v3294_v57  ;;  %v1978_v22 = vpop.permute.xlu1 %1977 }
0x10e5   :  { %2927 = vmatmul.mubr.msk.f32.vlgmr.msra.gmra.mrb[20].mxu0 %vm265_vm1, %v1831_v14 }
0x10e6   :  { %2929 = vmatprep.mubr.msk.f32.mxu0 %vm265_vm1, %v1833_v11  ;;  %2933 = vmatpush3.bf16.msra.mxu0 %v1976_v17 }
0x10e7   :  { %2934 = vmatprep.subr.bf16.mxu0 %v1978_v22 }
0x10e9   :  { %2930 = vmatmul.mubr.msk.f32.gmra.mrb[22].mxu0 %vm265_vm1, %v1835_v8 }
0x10ea   :  { %2935 = vmatpush3.bf16.msra.mxu0 %v1978_v22 }
0x10eb   :  { %2936 = vmatprep.subr.bf16.mxu0 %v1980_v56 }
0x10ee   :  { %2937 = vmatpush3.bf16.msra.mxu0 %v1980_v56 }
0x10ef   :  { %2938 = vmatprep.subr.bf16.mxu0 %v1982_v24 }
0x10f2   :  { %2939 = vmatpush3.bf16.msra.mxu0 %v1982_v24  ;;  %v3191_v24 = vld [vmem:[%s4102_s2 + $0x68] ss:$12 sps:$4 sm:$0xff]  }
0x10f3   :  { %2944 = vmatprep.subr.bf16.mxu1 %v3191_v24 }
0x10f4   :  { %2945 = vmatpush3.bf16.msra.mxu1 %v3191_v24 }
0x11b8   :  { %v2928_v55 = vpop.f32.mrb[20].mxu0 }
0x11b9   :  { %v1930_v23 = vpop.f32.mrb[21].mxu0 }
0x11ba   :  { %v3145_v15 = vpack.i.bf16 %v2928_v55, %v1930_v23  ;;  %v3192_v55 = vld [vmem:[%s4102_s2 + $0x80] ss:$12 sps:$4 sm:$0xff]   ;;  %v3193_v23 = vld [vmem:[%s4102_s2 + $0x98] ss:$12 sps:$4 sm:$0xff]  }
0x11bb   :  { %2946 = vmatprep.subr.bf16.mxu1 %v3192_v55 }
0x11bc   :  { %3146 = vrot.lane.b32.xlu1 %v3145_v15, %s3361_s15  ;;  %v2931_v16 = vpop.f32.mrb[22].mxu0  ;;  %2947 = vmatpush3.bf16.msra.mxu1 %v3192_v55  ;;  %v3194_v15 = vld [vmem:[%s4102_s2 + $0xb0] ss:$12 sps:$4 sm:$0xff]  }
0x11bd   :  { %v1940_v31 = vpop.f32.mrb[23].mxu0  ;;  %2948 = vmatprep.subr.bf16.mxu1 %v3193_v23 }
0x11be   :  { %v3150_v54 = vpack.i.bf16 %v2931_v16, %v1940_v31 }
0x11c0   :  { %3151 = vrot.lane.b32.xlu1 %v3150_v54, %s3361_s15  ;;  %2949 = vmatpush3.bf16.msra.mxu1 %v3193_v23 }
0x11c1   :  { %2950 = vmatprep.subr.bf16.mxu1 %v3194_v15 }
0x11c4   :  { %2951 = vmatpush3.bf16.msra.mxu1 %v3194_v15 }
0x122e   :  { %v3147_v27 = vpop.permute.xlu1 %3146 }
0x122f   :  { %v3149_v40 = vunpack.i.h.bf16 %v3147_v27  ;;  %v3148_v29 = vunpack.i.l.bf16 %v3147_v27 }
0x1231   :  { %v1966_v38 = vsel %vm265_vm1, %v3909_v62, %v3149_v40  ;;  %v1965_v49 = vsel %vm265_vm1, %v3911_v63, %v3148_v29  ;;  %v1974_v62 = vrot.slane %v3789_v26, %v822_v28 }
0x1232   :  { %v1969_v39 = vpack.c.bf16 %v1966_v38, %v1965_v49  ;;  %v3152_v35 = vpop.permute.xlu1 %3151 }
0x1233   :  { %v3154_v41 = vunpack.i.h.bf16 %v3152_v35  ;;  %v3153_v50 = vunpack.i.l.bf16 %v3152_v35 }
0x1234   :  { %2940 = vmatprep.mubr.msk.bf16.mxu0 %vm36_vm0, %v1969_v39 }
0x1235   :  { %v1968_v36 = vsel %vm265_vm1, %v3913_v1, %v3154_v41  ;;  %v1967_v37 = vsel %vm265_vm1, %v3915_v4, %v3153_v50 }
0x1236   :  { %v1970_v48 = vpack.c.bf16 %v1968_v36, %v1967_v37  ;;  %v2101_v36 = vrot.slane %v3789_v26, %v949_v43 }
0x1238   :  { %2941 = vmatmul.mubr.msk.bf16.vlgmr.msra.gmra.mrb[24].mxu0 %vm36_vm0, %v1970_v48 }
0x130b   :  { %v2942_v63 = vpop.f32.mrb[24].mxu0 }
0x130c   :  { %v2027_v30 = vpop.f32.mrb[25].mxu0  ;;  %v2036_v34 = vadd.f32 %v2942_v63, %v1974_v62 }
0x130d   :  { %v2028_v51 = vadd.f32 %v2027_v30, %v1974_v62  ;;  %v2943_v57 = vpop.f32.mrb[26].mxu0  ;;  %v2109_v30 = vrot.slane %v3789_v26, %v957_v46 }
0x130e   :  { %v2030_v58 = vpop.f32.mrb[27].mxu0  ;;  %v2039_v1 = vadd.f32 %v2943_v57, %v1974_v62  ;;  %v2044_v44 = vadd.f32 %v2036_v34, %v3781_v25 }
0x130f   :  { %v2031_v59 = vadd.f32 %v2030_v58, %v1974_v62  ;;  %v2042_v52 = vadd.f32 %v2028_v51, %v3771_v20 }
0x1310   :  { %v2052_v28 = vsel %vm36_vm0, %v2044_v44, 0.0  ;;  %v2045_v7 = vadd.f32 %v2039_v1, %v3779_v21 }
0x1311   :  { %v2046_v53 = vsel %vm36_vm0, %v2042_v52, 0.0  ;;  %v2043_v4 = vadd.f32 %v2031_v59, %v3773_v19 }
0x1312   :  { %2047 = vadd.xlane.f32.xlu0 %v2046_v53  ;;  %v2055_v61 = vsel %vm36_vm0, %v2045_v7, 0.0 }
0x1313   :  { %v2049_v45 = vsel %vm36_vm0, %v2043_v4, 0.0 }
0x1314   :  { %2050 = vadd.xlane.f32.xlu1 %v2049_v45 }
0x1316   :  { %2053 = vadd.xlane.f32.xlu0 %v2052_v28 }
0x131a   :  { %2056 = vadd.xlane.f32.xlu0 %v2055_v61  ;;  %v3196_v61 = vld [vmem:[%s4103_s3 + $0x48] sm:$0xff]  }
0x139f   :  { %v2048_v20 = vpop.xlane.xlu0 %2047 }
0x13a0   :  { %v2058_v33 = vmul.f32 0.015625, %v2048_v20  ;;  %v3197_v20 = vld [vmem:[%s4103_s3 + $0x50] sm:$0xff]  }
0x13a1   :  { %v2051_v10 = vpop.xlane.xlu1 %2050 }
0x13a2   :  { %v2062_v18 = vsub.f32 %v2042_v52, %v2058_v33  ;;  %v2059_v42 = vmul.f32 0.015625, %v2051_v10  ;;  %v3198_v33 = vld [vmem:[%s4103_s3 + $0x58] sm:$0xff]   ;;  %v3199_v10 = vld [vmem:[%s4103_s3 + $0x60] sm:$0xff]  }
0x13a3   :  { %v2054_v19 = vpop.xlane.xlu0 %2053 }
0x13a4   :  { %v2063_v2 = vsub.f32 %v2043_v4, %v2059_v42  ;;  %v2060_v25 = vmul.f32 0.015625, %v2054_v19  ;;  %v2066_v47 = vmul.f32 %v2062_v18, %v2062_v18  ;;  %v3201_v42 = vld [vmem:[%s4103_s3 + $0x70] sm:$0xff]   ;;  %v3202_v19 = vld [vmem:[%s4103_s3 + $0x78] sm:$0xff]  }
0x13a6   :  { %v2064_v32 = vsub.f32 %v2044_v44, %v2060_v25  ;;  %v2070_v12 = vsel %vm36_vm0, %v2066_v47, 0.0  ;;  %v2067_v13 = vmul.f32 %v2063_v2, %v2063_v2 }
0x13a7   :  { %2071 = vadd.xlane.f32.xlu0 %v2070_v12  ;;  %v2057_v14 = vpop.xlane.xlu0 %2056 }
0x13a8   :  { %v2061_v21 = vmul.f32 0.015625, %v2057_v14  ;;  %v2073_v9 = vsel %vm36_vm0, %v2067_v13, 0.0  ;;  %v2068_v11 = vmul.f32 %v2064_v32, %v2064_v32 }
0x13a9   :  { %2074 = vadd.xlane.f32.xlu1 %v2073_v9 }
0x13aa   :  { %v2065_v8 = vsub.f32 %v2045_v7, %v2061_v21  ;;  %v2076_v17 = vsel %vm36_vm0, %v2068_v11, 0.0  ;;  %v3195_v7 = vld [vmem:[%s4103_s3 + $0x40] sm:$0xff]  }
0x13ab   :  { %2077 = vadd.xlane.f32.xlu0 %v2076_v17  ;;  %2956 = vmatprep.subr.bf16.mxu0 %v3195_v7 }
0x13ac   :  { %v2069_v22 = vmul.f32 %v2065_v8, %v2065_v8  ;;  %2957 = vmatpush3.bf16.msra.mxu0 %v3195_v7  ;;  %v2240_v7 = vrot.slane %v3789_v26, %v1088_v60 }
0x13ad   :  { %2958 = vmatprep.subr.bf16.mxu0 %v3196_v61 }
0x13ae   :  { %v2079_v56 = vsel %vm36_vm0, %v2069_v22, 0.0 }
0x13af   :  { %2080 = vadd.xlane.f32.xlu1 %v2079_v56 }
0x13b0   :  { %2959 = vmatpush3.bf16.msra.mxu0 %v3196_v61 }
0x13b1   :  { %2960 = vmatprep.subr.bf16.mxu0 %v3197_v20 }
0x13b4   :  { %2961 = vmatpush3.bf16.msra.mxu0 %v3197_v20 }
0x13b5   :  { %2962 = vmatprep.subr.bf16.mxu0 %v3198_v33 }
0x13b8   :  { %2963 = vmatpush3.bf16.msra.mxu0 %v3198_v33 }
0x13b9   :  { %2964 = vmatprep.subr.bf16.mxu0 %v3199_v10 }
0x13bc   :  { %2965 = vmatpush3.bf16.msra.mxu0 %v3199_v10 }
0x1434   :  { %v2072_v16 = vpop.xlane.xlu0 %2071 }
0x1435   :  { %v2082_v31 = vmul.f32 0.015625, %v2072_v16 }
0x1436   :  { %v2075_v54 = vpop.xlane.xlu1 %2074 }
0x1437   :  { %v2086_v27 = vadd.f32 1e-12, %v2082_v31  ;;  %v2083_v40 = vmul.f32 0.015625, %v2075_v54 }
0x1438   :  { %v2078_v29 = vpop.xlane.xlu0 %2077 }
0x1439   :  { %3303 = vrsqrt.f32 %v2086_v27  ;;  %v2087_v38 = vadd.f32 1e-12, %v2083_v40  ;;  %v2084_v49 = vmul.f32 0.015625, %v2078_v29 }
0x143b   :  { %3305 = vrsqrt.f32 %v2087_v38  ;;  %v2088_v39 = vadd.f32 1e-12, %v2084_v49 }
0x143c   :  { %v2081_v35 = vpop.xlane.xlu1 %2080 }
0x143d   :  { %3307 = vrsqrt.f32 %v2088_v39  ;;  %v2085_v41 = vmul.f32 0.015625, %v2081_v35 }
0x143f   :  { %v2089_v50 = vadd.f32 1e-12, %v2085_v41 }
0x1441   :  { %3309 = vrsqrt.f32 %v2089_v50 }
0x1443   :  { %v3304_v37 = vpop.eup %3303 }
0x1444   :  { %v2094_v48 = vmul.f32 %v3304_v37, %v2062_v18  ;;  %v3200_v18 = vld [vmem:[%s4103_s3 + $0x68] sm:$0xff]  }
0x1445   :  { %v3306_v62 = vpop.eup %3305  ;;  %2966 = vmatprep.subr.bf16.mxu0 %v3200_v18 }
0x1446   :  { %v2095_v63 = vmul.f32 %v3306_v62, %v2063_v2  ;;  %v2102_v34 = vmul.f32 %v2101_v36, %v2094_v48  ;;  %2967 = vmatpush3.bf16.msra.mxu0 %v3200_v18  ;;  %v2119_v2 = vrot.slane %v3789_v26, %v967_v0 }
0x1447   :  { %v3308_v51 = vpop.eup %3307  ;;  %2968 = vmatprep.subr.bf16.mxu0 %v3201_v42 }
0x1448   :  { %v2096_v57 = vmul.f32 %v3308_v51, %v2064_v32  ;;  %v2103_v58 = vmul.f32 %v2101_v36, %v2095_v63  ;;  %v3994_v59 = vadd.f32 %v2109_v30, %v2102_v34 }
0x144a   :  { %v3996_v52 = vadd.f32 %v2109_v30, %v2103_v58  ;;  %v2104_v53 = vmul.f32 %v2101_v36, %v2096_v57  ;;  %2969 = vmatpush3.bf16.msra.mxu0 %v3201_v42 }
0x144b   :  { %v3310_v1 = vpop.eup %3309  ;;  %2970 = vmatprep.subr.bf16.mxu0 %v3202_v19 }
0x144c   :  { %v2097_v4 = vmul.f32 %v3310_v1, %v2065_v8  ;;  %v2114_v43 = vpack.c.bf16 %v3996_v52, %v3994_v59  ;;  %v4001_v45 = vadd.f32 %v2109_v30, %v2104_v53 }
0x144e   :  { %v2105_v44 = vmul.f32 %v2101_v36, %v2097_v4  ;;  %2952 = vmatprep.mubr.msk.bf16.mxu1 %vm36_vm0, %v2114_v43  ;;  %2971 = vmatpush3.bf16.msra.mxu0 %v3202_v19 }
0x1450   :  { %v4003_v46 = vadd.f32 %v2109_v30, %v2105_v44 }
0x1452   :  { %v2115_v28 = vpack.c.bf16 %v4003_v46, %v4001_v45 }
0x1454   :  { %2953 = vmatmul.mubr.msk.bf16.vlgmr.msra.gmra.mrb[36].mxu1 %vm36_vm0, %v2115_v28 }
0x1527   :  { %v2954_v25 = vpop.f32.mrb[36].mxu1 }
0x1528   :  { %v2193_v47 = vadd.f32 %v2954_v25, %v2119_v2  ;;  %v2184_v32 = vpop.f32.mrb[37].mxu1 }
0x1529   :  { %v2185_v12 = vadd.f32 %v2184_v32, %v2119_v2  ;;  %v2955_v13 = vpop.f32.mrb[38].mxu1 }
0x152a   :  { %v2205_v14 = vmul.f32 0.044715, %v2193_v47  ;;  %v2196_v21 = vadd.f32 %v2955_v13, %v2119_v2  ;;  %v2187_v9 = vpop.f32.mrb[39].mxu1  ;;  %v2201_v63 = vmul.f32 0.5, %v2193_v47 }
0x152b   :  { %v2203_v11 = vmul.f32 0.044715, %v2185_v12  ;;  %v2188_v8 = vadd.f32 %v2187_v9, %v2119_v2  ;;  %v2199_v51 = vmul.f32 0.5, %v2185_v12 }
0x152c   :  { %v2209_v17 = vmul.f32 %v2205_v14, %v2193_v47  ;;  %v2206_v22 = vmul.f32 0.044715, %v2196_v21  ;;  %v2202_v30 = vmul.f32 0.5, %v2196_v21 }
0x152d   :  { %v2207_v56 = vmul.f32 %v2203_v11, %v2185_v12  ;;  %v2204_v24 = vmul.f32 0.044715, %v2188_v8  ;;  %v2200_v57 = vmul.f32 0.5, %v2188_v8 }
0x152e   :  { %v2213_v55 = vmul.f32 %v2209_v17, %v2193_v47  ;;  %v2210_v23 = vmul.f32 %v2206_v22, %v2196_v21 }
0x152f   :  { %v2211_v15 = vmul.f32 %v2207_v56, %v2185_v12  ;;  %v2208_v16 = vmul.f32 %v2204_v24, %v2188_v8 }
0x1530   :  { %v2217_v31 = vadd.f32 %v2213_v55, %v2193_v47  ;;  %v2214_v0 = vmul.f32 %v2210_v23, %v2196_v21  ;;  %v3203_v23 = vld [vmem:[%s4106_s6] sm:$0xff]  }
0x1531   :  { %v2212_v54 = vmul.f32 %v2208_v16, %v2188_v8  ;;  %v2215_v27 = vadd.f32 %v2211_v15, %v2185_v12  ;;  %v3362_v15 = vmov 0.0   ;;  %v3206_v16 = vld [vmem:[%s4106_s6 + $0x18] sm:$0xff]  }
0x1532   :  { %v2221_v40 = vmul.f32 0.7978846, %v2217_v31  ;;  %v2218_v29 = vadd.f32 %v2214_v0, %v2196_v21  ;;  %2976 = vmatprep.subr.bf16.mxu1 %v3362_v15  ;;  %2984 = vmatprep.mubr.msk.bf16.mxu1 %vm3363_vm3, %v3362_v15 }
0x1533   :  { %v2216_v38 = vadd.f32 %v2212_v54, %v2188_v8  ;;  %v2219_v49 = vmul.f32 0.7978846, %v2215_v27  ;;  %2977 = vmatpush3.bf16.msra.mxu1 %v3203_v23 }
0x1534   :  { %3311 = vtanh.f32 %v2221_v40  ;;  %v2222_v39 = vmul.f32 0.7978846, %v2218_v29  ;;  %2978 = vmatprep.subr.bf16.mxu1 %v3362_v15 }
0x1535   :  { %v2220_v35 = vmul.f32 0.7978846, %v2216_v38  ;;  %3313 = vtanh.f32 %v2219_v49 }
0x1536   :  { %3315 = vtanh.f32 %v2222_v39 }
0x1537   :  { %3317 = vtanh.f32 %v2220_v35 }
0x153e   :  { %v3312_v41 = vpop.eup %3311 }
0x153f   :  { %v3314_v50 = vpop.eup %3313  ;;  %v2229_v36 = vadd.f32 1.0, %v3312_v41 }
0x1540   :  { %v3316_v37 = vpop.eup %3315  ;;  %v2227_v48 = vadd.f32 1.0, %v3314_v50 }
0x1541   :  { %v3318_v62 = vpop.eup %3317  ;;  %v2230_v34 = vadd.f32 1.0, %v3316_v37  ;;  %v2233_v1 = vmul.f32 %v2229_v36, %v2201_v63  ;;  %v2397_v63 = vrot.slane %v3789_v26, %v1245_v3 }
0x1542   :  { %v2228_v58 = vadd.f32 1.0, %v3318_v62  ;;  %v2231_v4 = vmul.f32 %v2227_v48, %v2199_v51  ;;  %v2405_v51 = vrot.slane %v3789_v26, %v1253_v5 }
0x1543   :  { %v2234_v53 = vmul.f32 %v2230_v34, %v2202_v30 }
0x1544   :  { %v2232_v43 = vmul.f32 %v2228_v58, %v2200_v57 }
0x1545   :  { %v2236_v44 = vpack.c.bf16 %v2234_v53, %v2233_v1 }
0x1546   :  { %v2235_v28 = vpack.c.bf16 %v2232_v43, %v2231_v4 }
0x1548   :  { %2972 = vmatprep.mubr.bf16.mxu0 %v2235_v28 }
0x1549   :  { %2973 = vmatmul.mubr.bf16.vlgmr.msra.gmra.mrb[28].mxu0 %v2236_v44 }
0x161c   :  { %v2974_v61 = vpop.f32.mrb[28].mxu0 }
0x161d   :  { %v2332_v20 = vadd.f32 %v2974_v61, %v2240_v7  ;;  %v2323_v33 = vpop.f32.mrb[29].mxu0 }
0x161e   :  { %v2324_v10 = vadd.f32 %v2323_v33, %v2240_v7  ;;  %v2975_v18 = vpop.f32.mrb[30].mxu0 }
0x161f   :  { %v2335_v42 = vadd.f32 %v2975_v18, %v2240_v7  ;;  %v2326_v19 = vpop.f32.mrb[31].mxu0  ;;  %v2340_v2 = vadd.f32 %v2332_v20, %v4001_v45 }
0x1620   :  { %v2327_v25 = vadd.f32 %v2326_v19, %v2240_v7  ;;  %v2338_v47 = vadd.f32 %v2324_v10, %v3994_v59 }
0x1621   :  { %v2348_v32 = vsel %vm36_vm0, %v2340_v2, 0.0  ;;  %v2341_v59 = vadd.f32 %v2335_v42, %v4003_v46  ;;  %v3205_v46 = vld [vmem:[%s4106_s6 + $0x10] sm:$0xff]  }
0x1622   :  { %2349 = vadd.xlane.f32.xlu0 %v2348_v32  ;;  %v2342_v12 = vsel %vm36_vm0, %v2338_v47, 0.0  ;;  %v2339_v22 = vadd.f32 %v2327_v25, %v3996_v52  ;;  %v3204_v52 = vld [vmem:[%s4106_s6 + $0x8] sm:$0xff]   ;;  %v2657_v32 = vld [vmem:[%s4105_s5 + $0x2] ss:$0 sm:$0xff] }
0x1623   :  { %2343 = vadd.xlane.f32.xlu1 %v2342_v12  ;;  %v2351_v55 = vsel %vm36_vm0, %v2341_v59, 0.0  ;;  %2979 = vmatpush3.bf16.msra.mxu1 %v3204_v52 }
0x1624   :  { %v2345_v24 = vsel %vm36_vm0, %v2339_v22, 0.0  ;;  %2980 = vmatprep.subr.bf16.mxu1 %v3362_v15 }
0x1627   :  { %2981 = vmatpush3.bf16.msra.mxu1 %v3205_v46 }
0x1628   :  { %2982 = vmatprep.subr.bf16.mxu1 %v3362_v15 }
0x162b   :  { %2983 = vmatpush3.bf16.msra.mxu1 %v3206_v16 }
0x16af   :  { %v2350_v13 = vpop.xlane.xlu0 %2349 }
0x16b0   :  { %v2356_v60 = vmul.f32 0.015625, %v2350_v13  ;;  %v2344_v14 = vpop.xlane.xlu1 %2343 }
0x16b1   :  { %v2354_v21 = vmul.f32 0.015625, %v2344_v14 }
0x16b2   :  { %v2360_v9 = vsub.f32 %v2340_v2, %v2356_v60 }
0x16b3   :  { %v2358_v11 = vsub.f32 %v2338_v47, %v2354_v21 }
0x16b4   :  { %v2364_v8 = vmul.f32 %v2360_v9, %v2360_v9 }
0x16b5   :  { %v2362_v17 = vmul.f32 %v2358_v11, %v2358_v11 }
0x16b6   :  { %v2372_v45 = vsel %vm36_vm0, %v2364_v8, 0.0 }
0x16b7   :  { %2373 = vadd.xlane.f32.xlu0 %v2372_v45  ;;  %v2366_v56 = vsel %vm36_vm0, %v2362_v17, 0.0 }
0x16b8   :  { %2367 = vadd.xlane.f32.xlu1 %v2366_v56 }
0x16bb   :  { %2346 = vadd.xlane.f32.xlu0 %v2345_v24 }
0x16bc   :  { %2352 = vadd.xlane.f32.xlu1 %v2351_v55 }
0x1744   :  { %v2374_v31 = vpop.xlane.xlu0 %2373 }
0x1745   :  { %v2380_v0 = vmul.f32 0.015625, %v2374_v31  ;;  %v2368_v54 = vpop.xlane.xlu1 %2367 }
0x1746   :  { %v2378_v27 = vmul.f32 0.015625, %v2368_v54 }
0x1747   :  { %v2384_v40 = vadd.f32 1e-12, %v2380_v0 }
0x1748   :  { %v2382_v29 = vadd.f32 1e-12, %v2378_v27  ;;  %v2347_v38 = vpop.xlane.xlu0 %2346 }
0x1749   :  { %3319 = vrsqrt.f32 %v2384_v40  ;;  %v2355_v49 = vmul.f32 0.015625, %v2347_v38  ;;  %v2353_v39 = vpop.xlane.xlu1 %2352 }
0x174a   :  { %3321 = vrsqrt.f32 %v2382_v29  ;;  %v2357_v35 = vmul.f32 0.015625, %v2353_v39 }
0x174b   :  { %v2359_v41 = vsub.f32 %v2339_v22, %v2355_v49 }
0x174c   :  { %v2361_v50 = vsub.f32 %v2341_v59, %v2357_v35 }
0x174d   :  { %v2363_v36 = vmul.f32 %v2359_v41, %v2359_v41 }
0x174e   :  { %v2365_v37 = vmul.f32 %v2361_v50, %v2361_v50 }
0x174f   :  { %v2369_v48 = vsel %vm36_vm0, %v2363_v36, 0.0 }
0x1750   :  { %2370 = vadd.xlane.f32.xlu0 %v2369_v48  ;;  %v2375_v62 = vsel %vm36_vm0, %v2365_v37, 0.0 }
0x1751   :  { %2376 = vadd.xlane.f32.xlu1 %v2375_v62 }
0x1753   :  { %v3320_v30 = vpop.eup %3319 }
0x1754   :  { %v3322_v34 = vpop.eup %3321  ;;  %v2392_v57 = vmul.f32 %v3320_v30, %v2360_v9 }
0x1755   :  { %v2390_v58 = vmul.f32 %v3322_v34, %v2358_v11 }
0x1756   :  { %v2400_v1 = vmul.f32 %v2397_v63, %v2392_v57 }
0x1757   :  { %v2398_v53 = vmul.f32 %v2397_v63, %v2390_v58 }
0x1758   :  { %v2408_v4 = vadd.f32 %v2405_v51, %v2400_v1 }
0x1759   :  { %v2406_v43 = vadd.f32 %v2405_v51, %v2398_v53 }
0x175a   :  { %2412 = vst.msk [vmem:[%s4107_s7 + $0x10] sm:$0xff] %vm36_vm0, %v2408_v4  ;;  %v2415_v44 = vrot.slane %v2408_v4, 7 }
0x175b   :  { %2410 = vst.msk [vmem:[%s4107_s7] sm:$0xff] %vm36_vm0, %v2406_v43 }
0x175c   :  { %v2418_v6 = vsel %vm2417_vm4, %v2406_v43, %v2415_v44 }
0x175d   :  { %v2419_v3 = vpack.c.bf16 %v2418_v6, %v2418_v6 }
0x175f   :  { %2985 = vmatmul.mubr.msk.bf16.vlgmr.msra.gmra.mrb[40].mxu1 %vm36_vm0, %v2419_v3 }
0x17dd   :  { %v2371_v5 = vpop.xlane.xlu0 %2370 }
0x17de   :  { %v2379_v26 = vmul.f32 0.015625, %v2371_v5  ;;  %v2377_v28 = vpop.xlane.xlu1 %2376 }
0x17df   :  { %v2381_v7 = vmul.f32 0.015625, %v2377_v28 }
0x17e0   :  { %v2383_v61 = vadd.f32 1e-12, %v2379_v26 }
0x17e1   :  { %v2385_v20 = vadd.f32 1e-12, %v2381_v7 }
0x17e2   :  { %3323 = vrsqrt.f32 %v2383_v61 }
0x17e3   :  { %3325 = vrsqrt.f32 %v2385_v20 }
0x17ec   :  { %v3324_v33 = vpop.eup %3323 }
0x17ed   :  { %v3326_v10 = vpop.eup %3325  ;;  %v2391_v18 = vmul.f32 %v3324_v33, %v2359_v41 }
0x17ee   :  { %v2393_v42 = vmul.f32 %v3326_v10, %v2361_v50 }
0x17ef   :  { %v2399_v19 = vmul.f32 %v2397_v63, %v2391_v18 }
0x17f0   :  { %v2401_v2 = vmul.f32 %v2397_v63, %v2393_v42 }
0x17f1   :  { %v2407_v25 = vadd.f32 %v2405_v51, %v2399_v19 }
0x17f2   :  { %v2409_v47 = vadd.f32 %v2405_v51, %v2401_v2 }
0x17f3   :  { %2411 = vst.msk [vmem:[%s4107_s7 + $0x8] sm:$0xff] %vm36_vm0, %v2407_v25 }
0x17f4   :  { %2413 = vst.msk [vmem:[%s4107_s7 + $0x18] sm:$0xff] %vm36_vm0, %v2409_v47 }
0x1832   :  { %v2494_v12 = vpop.f32.mrb[40].mxu1 }
0x1833   :  { %v2495_v13 = vadd.f32 %v2657_v32, %v2494_v12  ;;  %v2986_v60 = vpop.f32.mrb[41].mxu1 }
0x1834   :  { %v2497_v14 = vpop.f32.mrb[42].mxu1 }
0x1835   :  { %3327 = vtanh.f32 %v2495_v13  ;;  %v2987_v21 = vpop.f32.mrb[43].mxu1 }
0x183f   :  { %v3328_v9 = vpop.eup %3327 }
0x1840   :  { %2502 = vst.msk [vmem:[#allocation2] sm:$0x3] %vm2501_vm5, %v3328_v9 }
0x1841   :  { %3345 = shalt.err (!%p3342_p4)
}
0x1842   :  { %s3346_s29 = scalar_lea.hbm %s4108_s8, 32 }
0x1843   :  { %p3347_p5 = scmp.ne.s32.totalorder %s4108_s8, %s3346_s29  ;;  %p3350_p6 = scmp.lt.u32.totalorder %s3346_s29, %s4108_s8 }
0x1845   :  { %p3352_p7 = pnand %p3350_p6, %p3347_p5 }
0x1847   :  { %3355 = shalt.err (!%p3352_p7)
}
0x1848   :  { %2514 = dma.vmem_to_hbm [thread:$0]  %s2512_s27, 32, %s4108_s8, [#allocation3]  }
0x1849   :  { %3356 = dma.done.wait [#allocation3], 32  }
0x184a   :  { %3357 = vsyncadd [#allocation3], 4294967264 }
0x184b   :  { %2520 = vsyncpa [#allocation3], 1 }

</bundles_post_ra>
